<compile_context>
chip_gen: v6e
topology: v6e:2x2x1
jax: 0.10.0
libtpu: 0.0.40
codegen_flags: <defaults>
</compile_context>

<pallas_src>
import jax
import jax.numpy as jnp
import numpy as np
from jax.experimental import pallas as pl
from jax.experimental.pallas import tpu as pltpu


def _make_san2d_kernel(k_list, H, W, pb_max, n_filters):
    """Fused kernel: for every filter, conv -> ReLU -> conv, summed over filters."""

    def kernel(*refs):
        w_refs = refs[:n_filters]          # SMEM (k*k,) f32, one per filter
        xpad_ref = refs[n_filters]         # VMEM (TN, Hp, Wp) f32, max-padded images
        out_ref = refs[n_filters + 1]      # VMEM (TN, H, W) f32
        act_pad_ref = refs[n_filters + 2]  # VMEM (TN, Hp, Wp) f32 scratch

        # Zero the padded-activation scratch once per invocation; the inner
        # H x W window is fully overwritten per filter, the border stays zero.
        act_pad_ref[...] = jnp.zeros_like(act_pad_ref)

        xpad = xpad_ref[...]                                 # (TN, Hp, Wp)
        recon = jnp.zeros(out_ref.shape, jnp.float32)        # (TN, H, W)

        for w_ref, k in zip(w_refs, k_list):
            # Static shift of this filter's padding inside the max-padded frame.
            off = pb_max - (k - 1) // 2

            # --- similarity conv: k*k-tap multiply-accumulate on the VPU ---
            acc = jnp.zeros(out_ref.shape, jnp.float32)
            for a in range(k):
                for b in range(k):
                    acc = acc + w_ref[a * k + b] * xpad[
                        :, off + a: off + a + H, off + b: off + b + W]

            # --- sparse activation (ReLU) ---
            act = jnp.maximum(acc, 0.0)

            # --- stage act inside a zero-bordered frame, then reconstruct ---
            act_pad_ref[:, pb_max:pb_max + H, pb_max:pb_max + W] = act
            ap = act_pad_ref[...]
            for a in range(k):
                for b in range(k):
                    recon = recon + w_ref[a * k + b] * ap[
                        :, off + a: off + a + H, off + b: off + b + W]

        out_ref[...] = recon

    return kernel


def san2d_forward(x, weights_list):
    """x: (N, 1, H, W) float32 (NCHW).  Returns (N, 1, H, W) reconstruction."""
    N, C, H, W = x.shape
    assert C == 1, "SAN2d conv weights are (1,1,k,k) -> single input channel"
    x2 = x[:, 0].astype(jnp.float32)

    k_list = [int(w.shape[0]) for w in weights_list]
    n_f = len(k_list)
    k_max = max(k_list)
    # Same-padding per PyTorch's _conv2d_same_padding: (k-1)//2 before, k//2 after.
    pb_max, pa_max = (k_max - 1) // 2, k_max // 2
    Hp, Wp = H + pb_max + pa_max, W + pb_max + pa_max

    # Pad once with the maximum padding; smaller filters just use a static
    # offset into this frame (the extra border is zeros, so results are exact).
    xpad = jnp.pad(x2, ((0, 0), (pb_max, pa_max), (pb_max, pa_max)))
    w_flats = [w.reshape(-1).astype(jnp.float32) for w in weights_list]

    # Batch-tile size: largest divisor of N fitting a conservative VMEM budget
    # (double-buffered input + output blocks plus the act scratch), safe for
    # v7x's smaller VMEM.  vmem_limit_bytes is set explicitly with headroom.
    per_image_bytes = 4 * (3 * Hp * Wp + 2 * H * W)
    budget_bytes = 20 * 1024 * 1024
    TN = 1
    for d in range(1, N + 1):
        if N % d == 0 and d * per_image_bytes <= budget_bytes:
            TN = d
    grid = (N // TN,)

    kernel = _make_san2d_kernel(k_list, H, W, pb_max, n_f)

    in_specs = [pl.BlockSpec(memory_space=pltpu.MemorySpace.SMEM)] * n_f + [
        pl.BlockSpec((TN, Hp, Wp), lambda n: (n, 0, 0)),
    ]

    out = pl.pallas_call(
        kernel,
        out_shape=jax.ShapeDtypeStruct((N, H, W), jnp.float32),
        grid=grid,
        in_specs=in_specs,
        out_specs=pl.BlockSpec((TN, H, W), lambda n: (n, 0, 0)),
        scratch_shapes=[pltpu.VMEM((TN, Hp, Wp), jnp.float32)],
        compiler_params=pltpu.CompilerParams(
            dimension_semantics=("parallel",),
            vmem_limit_bytes=32 * 1024 * 1024,
        ),
    )(*w_flats, xpad)

    return out[:, None, :, :]


# ---------------- pure-JAX reference (mirrors the PyTorch module) -----------
def _conv2d_same_ref(x4, w):
    # Literal transcription of _conv2d_same_padding:
    #   padding = k - 1; if padding is odd -> F.pad(x, [0,1,0,1]); conv pad = padding//2
    k = w.shape[0]
    padding = k - 1
    if padding % 2 != 0:
        x4 = jnp.pad(x4, ((0, 0), (0, 0), (0, 1), (0, 1)))
    p = padding // 2
    return jax.lax.conv_general_dilated(
        x4, w[None, None, :, :], window_strides=(1, 1),
        padding=((p, p), (p, p)),
        dimension_numbers=("NCHW", "OIHW", "NCHW"))


def san2d_ref(x, weights_list):
    recon = jnp.zeros_like(x)
    for w in weights_list:
        sim = _conv2d_same_ref(x, w)
        act = jnp.maximum(sim, 0.0)     # sparse activation == ReLU
        recon = recon + _conv2d_same_ref(act, w)
    return recon


if __name__ == "__main__":
    key = jax.random.PRNGKey(0)
    N, C, H, W = 2, 1, 16, 16
    kernel_size_list = [3, 4]  # one odd, one even kernel -> both padding paths

    x = jax.random.normal(key, (N, C, H, W), dtype=jnp.float32)
    # deterministic params, as in the module __init__: 0.1 * ones(k, k)
    weights_list = [0.1 * jnp.ones((k, k), jnp.float32) for k in kernel_size_list]

    out = san2d_forward(x, weights_list)
    out = jax.block_until_ready(out)

    ref = san2d_ref(x, weights_list)
    assert out.shape == (N, C, H, W)
    np.testing.assert_allclose(np.asarray(out), np.asarray(ref),
                               rtol=1e-5, atol=1e-5)
    print("KERNEL_OK")
</pallas_src>

<mosaic_0001>
module attributes {stable_mosaic.version = 11 : i64} {
  func.func @kernel(%arg0: i32, %arg1: memref<9xf32, #tpu.memory_space<smem>>, %arg2: memref<16xf32, #tpu.memory_space<smem>>, %arg3: memref<2x19x19xf32, #tpu.memory_space<vmem>>, %arg4: memref<2x16x16xf32, #tpu.memory_space<vmem>>, %arg5: memref<2x19x19xf32, #tpu.memory_space<vmem>>) attributes {dimension_semantics = [#tpu.dimension_semantics<parallel>], iteration_bounds = array<i64: 1>, scalar_prefetch = 0 : i64, scratch_operands = 1 : i64, tpu.core_type = #tpu.core_type<tc>, window_params = [{transform_indices = @transform_0, window_bounds = array<i64: 9>}, {transform_indices = @transform_1, window_bounds = array<i64: 16>}, {transform_indices = @transform_2, window_bounds = array<i64: 2, 19, 19>}, {transform_indices = @transform_3, window_bounds = array<i64: 2, 16, 16>}]} {
    %cst = arith.constant 0.000000e+00 : f32
    %0 = vector.broadcast %cst : f32 to vector<2x19x19xf32>
    %c0 = arith.constant 0 : index
    %c0_0 = arith.constant 0 : index
    %c0_1 = arith.constant 0 : index
    %1 = vector.load %arg5[%c0, %c0_0, %c0_1] : memref<2x19x19xf32, #tpu.memory_space<vmem>>, vector<2x19x19xf32>
    tpu.vector_store %arg5[%c0, %c0_0, %c0_1], %0 {strides = array<i32>} : memref<2x19x19xf32, #tpu.memory_space<vmem>>, vector<2x19x19xf32>,
    %c0_2 = arith.constant 0 : index
    %c0_3 = arith.constant 0 : index
    %c0_4 = arith.constant 0 : index
    %2 = vector.load %arg3[%c0_2, %c0_3, %c0_4] : memref<2x19x19xf32, #tpu.memory_space<vmem>>, vector<2x19x19xf32>
    %cst_5 = arith.constant 0.000000e+00 : f32
    %3 = vector.broadcast %cst_5 : f32 to vector<2x16x16xf32>
    %cst_6 = arith.constant 0.000000e+00 : f32
    %4 = vector.broadcast %cst_6 : f32 to vector<2x16x16xf32>
    %c0_7 = arith.constant 0 : index
    %5 = memref.load %arg1[%c0_7] : memref<9xf32, #tpu.memory_space<smem>>
    %6 = vector.extract_strided_slice %2 {offsets = [0, 0, 0], sizes = [2, 16, 16], strides = [1, 1, 1]} : vector<2x19x19xf32> to vector<2x16x16xf32>
    %7 = vector.broadcast %5 : f32 to vector<2x16x16xf32>
    %8 = arith.mulf %7, %6 : vector<2x16x16xf32>
    %9 = arith.addf %4, %8 : vector<2x16x16xf32>
    %c1 = arith.constant 1 : index
    %10 = memref.load %arg1[%c1] : memref<9xf32, #tpu.memory_space<smem>>
    %11 = vector.extract_strided_slice %2 {offsets = [0, 0, 1], sizes = [2, 16, 16], strides = [1, 1, 1]} : vector<2x19x19xf32> to vector<2x16x16xf32>
    %12 = vector.broadcast %10 : f32 to vector<2x16x16xf32>
    %13 = arith.mulf %12, %11 : vector<2x16x16xf32>
    %14 = arith.addf %9, %13 : vector<2x16x16xf32>
    %c2 = arith.constant 2 : index
    %15 = memref.load %arg1[%c2] : memref<9xf32, #tpu.memory_space<smem>>
    %16 = vector.extract_strided_slice %2 {offsets = [0, 0, 2], sizes = [2, 16, 16], strides = [1, 1, 1]} : vector<2x19x19xf32> to vector<2x16x16xf32>
    %17 = vector.broadcast %15 : f32 to vector<2x16x16xf32>
    %18 = arith.mulf %17, %16 : vector<2x16x16xf32>
    %19 = arith.addf %14, %18 : vector<2x16x16xf32>
    %c3 = arith.constant 3 : index
    %20 = memref.load %arg1[%c3] : memref<9xf32, #tpu.memory_space<smem>>
    %21 = vector.extract_strided_slice %2 {offsets = [0, 1, 0], sizes = [2, 16, 16], strides = [1, 1, 1]} : vector<2x19x19xf32> to vector<2x16x16xf32>
    %22 = vector.broadcast %20 : f32 to vector<2x16x16xf32>
    %23 = arith.mulf %22, %21 : vector<2x16x16xf32>
    %24 = arith.addf %19, %23 : vector<2x16x16xf32>
    %c4 = arith.constant 4 : index
    %25 = memref.load %arg1[%c4] : memref<9xf32, #tpu.memory_space<smem>>
    %26 = vector.extract_strided_slice %2 {offsets = [0, 1, 1], sizes = [2, 16, 16], strides = [1, 1, 1]} : vector<2x19x19xf32> to vector<2x16x16xf32>
    %27 = vector.broadcast %25 : f32 to vector<2x16x16xf32>
    %28 = arith.mulf %27, %26 : vector<2x16x16xf32>
    %29 = arith.addf %24, %28 : vector<2x16x16xf32>
    %c5 = arith.constant 5 : index
    %30 = memref.load %arg1[%c5] : memref<9xf32, #tpu.memory_space<smem>>
    %31 = vector.extract_strided_slice %2 {offsets = [0, 1, 2], sizes = [2, 16, 16], strides = [1, 1, 1]} : vector<2x19x19xf32> to vector<2x16x16xf32>
    %32 = vector.broadcast %30 : f32 to vector<2x16x16xf32>
    %33 = arith.mulf %32, %31 : vector<2x16x16xf32>
    %34 = arith.addf %29, %33 : vector<2x16x16xf32>
    %c6 = arith.constant 6 : index
    %35 = memref.load %arg1[%c6] : memref<9xf32, #tpu.memory_space<smem>>
    %36 = vector.extract_strided_slice %2 {offsets = [0, 2, 0], sizes = [2, 16, 16], strides = [1, 1, 1]} : vector<2x19x19xf32> to vector<2x16x16xf32>
    %37 = vector.broadcast %35 : f32 to vector<2x16x16xf32>
    %38 = arith.mulf %37, %36 : vector<2x16x16xf32>
    %39 = arith.addf %34, %38 : vector<2x16x16xf32>
    %c7 = arith.constant 7 : index
    %40 = memref.load %arg1[%c7] : memref<9xf32, #tpu.memory_space<smem>>
    %41 = vector.extract_strided_slice %2 {offsets = [0, 2, 1], sizes = [2, 16, 16], strides = [1, 1, 1]} : vector<2x19x19xf32> to vector<2x16x16xf32>
    %42 = vector.broadcast %40 : f32 to vector<2x16x16xf32>
    %43 = arith.mulf %42, %41 : vector<2x16x16xf32>
    %44 = arith.addf %39, %43 : vector<2x16x16xf32>
    %c8 = arith.constant 8 : index
    %45 = memref.load %arg1[%c8] : memref<9xf32, #tpu.memory_space<smem>>
    %46 = vector.extract_strided_slice %2 {offsets = [0, 2, 2], sizes = [2, 16, 16], strides = [1, 1, 1]} : vector<2x19x19xf32> to vector<2x16x16xf32>
    %47 = vector.broadcast %45 : f32 to vector<2x16x16xf32>
    %48 = arith.mulf %47, %46 : vector<2x16x16xf32>
    %49 = arith.addf %44, %48 : vector<2x16x16xf32>
    %cst_8 = arith.constant 0.000000e+00 : f32
    %50 = vector.broadcast %cst_8 : f32 to vector<2x16x16xf32>
    %51 = arith.maximumf %49, %50 : vector<2x16x16xf32>
    %c0_9 = arith.constant 0 : index
    %c1_10 = arith.constant 1 : index
    %c1_11 = arith.constant 1 : index
    %52 = vector.load %arg5[%c0_9, %c1_10, %c1_11] : memref<2x19x19xf32, #tpu.memory_space<vmem>>, vector<2x16x16xf32>
    tpu.vector_store %arg5[%c0_9, %c1_10, %c1_11], %51 {strides = array<i32>} : memref<2x19x19xf32, #tpu.memory_space<vmem>>, vector<2x16x16xf32>,
    %c0_12 = arith.constant 0 : index
    %c0_13 = arith.constant 0 : index
    %c0_14 = arith.constant 0 : index
    %53 = vector.load %arg5[%c0_12, %c0_13, %c0_14] : memref<2x19x19xf32, #tpu.memory_space<vmem>>, vector<2x19x19xf32>
    %c0_15 = arith.constant 0 : index
    %54 = memref.load %arg1[%c0_15] : memref<9xf32, #tpu.memory_space<smem>>
    %55 = vector.extract_strided_slice %53 {offsets = [0, 0, 0], sizes = [2, 16, 16], strides = [1, 1, 1]} : vector<2x19x19xf32> to vector<2x16x16xf32>
    %56 = vector.broadcast %54 : f32 to vector<2x16x16xf32>
    %57 = arith.mulf %56, %55 : vector<2x16x16xf32>
    %58 = arith.addf %3, %57 : vector<2x16x16xf32>
    %c1_16 = arith.constant 1 : index
    %59 = memref.load %arg1[%c1_16] : memref<9xf32, #tpu.memory_space<smem>>
    %60 = vector.extract_strided_slice %53 {offsets = [0, 0, 1], sizes = [2, 16, 16], strides = [1, 1, 1]} : vector<2x19x19xf32> to vector<2x16x16xf32>
    %61 = vector.broadcast %59 : f32 to vector<2x16x16xf32>
    %62 = arith.mulf %61, %60 : vector<2x16x16xf32>
    %63 = arith.addf %58, %62 : vector<2x16x16xf32>
    %c2_17 = arith.constant 2 : index
    %64 = memref.load %arg1[%c2_17] : memref<9xf32, #tpu.memory_space<smem>>
    %65 = vector.extract_strided_slice %53 {offsets = [0, 0, 2], sizes = [2, 16, 16], strides = [1, 1, 1]} : vector<2x19x19xf32> to vector<2x16x16xf32>
    %66 = vector.broadcast %64 : f32 to vector<2x16x16xf32>
    %67 = arith.mulf %66, %65 : vector<2x16x16xf32>
    %68 = arith.addf %63, %67 : vector<2x16x16xf32>
    %c3_18 = arith.constant 3 : index
    %69 = memref.load %arg1[%c3_18] : memref<9xf32, #tpu.memory_space<smem>>
    %70 = vector.extract_strided_slice %53 {offsets = [0, 1, 0], sizes = [2, 16, 16], strides = [1, 1, 1]} : vector<2x19x19xf32> to vector<2x16x16xf32>
    %71 = vector.broadcast %69 : f32 to vector<2x16x16xf32>
    %72 = arith.mulf %71, %70 : vector<2x16x16xf32>
    %73 = arith.addf %68, %72 : vector<2x16x16xf32>
    %c4_19 = arith.constant 4 : index
    %74 = memref.load %arg1[%c4_19] : memref<9xf32, #tpu.memory_space<smem>>
    %75 = vector.extract_strided_slice %53 {offsets = [0, 1, 1], sizes = [2, 16, 16], strides = [1, 1, 1]} : vector<2x19x19xf32> to vector<2x16x16xf32>
    %76 = vector.broadcast %74 : f32 to vector<2x16x16xf32>
    %77 = arith.mulf %76, %75 : vector<2x16x16xf32>
    %78 = arith.addf %73, %77 : vector<2x16x16xf32>
    %c5_20 = arith.constant 5 : index
    %79 = memref.load %arg1[%c5_20] : memref<9xf32, #tpu.memory_space<smem>>
    %80 = vector.extract_strided_slice %53 {offsets = [0, 1, 2], sizes = [2, 16, 16], strides = [1, 1, 1]} : vector<2x19x19xf32> to vector<2x16x16xf32>
    %81 = vector.broadcast %79 : f32 to vector<2x16x16xf32>
    %82 = arith.mulf %81, %80 : vector<2x16x16xf32>
    %83 = arith.addf %78, %82 : vector<2x16x16xf32>
    %c6_21 = arith.constant 6 : index
    %84 = memref.load %arg1[%c6_21] : memref<9xf32, #tpu.memory_space<smem>>
    %85 = vector.extract_strided_slice %53 {offsets = [0, 2, 0], sizes = [2, 16, 16], strides = [1, 1, 1]} : vector<2x19x19xf32> to vector<2x16x16xf32>
    %86 = vector.broadcast %84 : f32 to vector<2x16x16xf32>
    %87 = arith.mulf %86, %85 : vector<2x16x16xf32>
    %88 = arith.addf %83, %87 : vector<2x16x16xf32>
    %c7_22 = arith.constant 7 : index
    %89 = memref.load %arg1[%c7_22] : memref<9xf32, #tpu.memory_space<smem>>
    %90 = vector.extract_strided_slice %53 {offsets = [0, 2, 1], sizes = [2, 16, 16], strides = [1, 1, 1]} : vector<2x19x19xf32> to vector<2x16x16xf32>
    %91 = vector.broadcast %89 : f32 to vector<2x16x16xf32>
    %92 = arith.mulf %91, %90 : vector<2x16x16xf32>
    %93 = arith.addf %88, %92 : vector<2x16x16xf32>
    %c8_23 = arith.constant 8 : index
    %94 = memref.load %arg1[%c8_23] : memref<9xf32, #tpu.memory_space<smem>>
    %95 = vector.extract_strided_slice %53 {offsets = [0, 2, 2], sizes = [2, 16, 16], strides = [1, 1, 1]} : vector<2x19x19xf32> to vector<2x16x16xf32>
    %96 = vector.broadcast %94 : f32 to vector<2x16x16xf32>
    %97 = arith.mulf %96, %95 : vector<2x16x16xf32>
    %98 = arith.addf %93, %97 : vector<2x16x16xf32>
    %cst_24 = arith.constant 0.000000e+00 : f32
    %99 = vector.broadcast %cst_24 : f32 to vector<2x16x16xf32>
    %c0_25 = arith.constant 0 : index
    %100 = memref.load %arg2[%c0_25] : memref<16xf32, #tpu.memory_space<smem>>
    %101 = vector.extract_strided_slice %2 {offsets = [0, 0, 0], sizes = [2, 16, 16], strides = [1, 1, 1]} : vector<2x19x19xf32> to vector<2x16x16xf32>
    %102 = vector.broadcast %100 : f32 to vector<2x16x16xf32>
    %103 = arith.mulf %102, %101 : vector<2x16x16xf32>
    %104 = arith.addf %99, %103 : vector<2x16x16xf32>
    %c1_26 = arith.constant 1 : index
    %105 = memref.load %arg2[%c1_26] : memref<16xf32, #tpu.memory_space<smem>>
    %106 = vector.extract_strided_slice %2 {offsets = [0, 0, 1], sizes = [2, 16, 16], strides = [1, 1, 1]} : vector<2x19x19xf32> to vector<2x16x16xf32>
    %107 = vector.broadcast %105 : f32 to vector<2x16x16xf32>
    %108 = arith.mulf %107, %106 : vector<2x16x16xf32>
    %109 = arith.addf %104, %108 : vector<2x16x16xf32>
    %c2_27 = arith.constant 2 : index
    %110 = memref.load %arg2[%c2_27] : memref<16xf32, #tpu.memory_space<smem>>
    %111 = vector.extract_strided_slice %2 {offsets = [0, 0, 2], sizes = [2, 16, 16], strides = [1, 1, 1]} : vector<2x19x19xf32> to vector<2x16x16xf32>
    %112 = vector.broadcast %110 : f32 to vector<2x16x16xf32>
    %113 = arith.mulf %112, %111 : vector<2x16x16xf32>
    %114 = arith.addf %109, %113 : vector<2x16x16xf32>
    %c3_28 = arith.constant 3 : index
    %115 = memref.load %arg2[%c3_28] : memref<16xf32, #tpu.memory_space<smem>>
    %116 = vector.extract_strided_slice %2 {offsets = [0, 0, 3], sizes = [2, 16, 16], strides = [1, 1, 1]} : vector<2x19x19xf32> to vector<2x16x16xf32>
    %117 = vector.broadcast %115 : f32 to vector<2x16x16xf32>
    %118 = arith.mulf %117, %116 : vector<2x16x16xf32>
    %119 = arith.addf %114, %118 : vector<2x16x16xf32>
    %c4_29 = arith.constant 4 : index
    %120 = memref.load %arg2[%c4_29] : memref<16xf32, #tpu.memory_space<smem>>
    %121 = vector.extract_strided_slice %2 {offsets = [0, 1, 0], sizes = [2, 16, 16], strides = [1, 1, 1]} : vector<2x19x19xf32> to vector<2x16x16xf32>
    %122 = vector.broadcast %120 : f32 to vector<2x16x16xf32>
    %123 = arith.mulf %122, %121 : vector<2x16x16xf32>
    %124 = arith.addf %119, %123 : vector<2x16x16xf32>
    %c5_30 = arith.constant 5 : index
    %125 = memref.load %arg2[%c5_30] : memref<16xf32, #tpu.memory_space<smem>>
    %126 = vector.extract_strided_slice %2 {offsets = [0, 1, 1], sizes = [2, 16, 16], strides = [1, 1, 1]} : vector<2x19x19xf32> to vector<2x16x16xf32>
    %127 = vector.broadcast %125 : f32 to vector<2x16x16xf32>
    %128 = arith.mulf %127, %126 : vector<2x16x16xf32>
    %129 = arith.addf %124, %128 : vector<2x16x16xf32>
    %c6_31 = arith.constant 6 : index
    %130 = memref.load %arg2[%c6_31] : memref<16xf32, #tpu.memory_space<smem>>
    %131 = vector.extract_strided_slice %2 {offsets = [0, 1, 2], sizes = [2, 16, 16], strides = [1, 1, 1]} : vector<2x19x19xf32> to vector<2x16x16xf32>
    %132 = vector.broadcast %130 : f32 to vector<2x16x16xf32>
    %133 = arith.mulf %132, %131 : vector<2x16x16xf32>
    %134 = arith.addf %129, %133 : vector<2x16x16xf32>
    %c7_32 = arith.constant 7 : index
    %135 = memref.load %arg2[%c7_32] : memref<16xf32, #tpu.memory_space<smem>>
    %136 = vector.extract_strided_slice %2 {offsets = [0, 1, 3], sizes = [2, 16, 16], strides = [1, 1, 1]} : vector<2x19x19xf32> to vector<2x16x16xf32>
    %137 = vector.broadcast %135 : f32 to vector<2x16x16xf32>
    %138 = arith.mulf %137, %136 : vector<2x16x16xf32>
    %139 = arith.addf %134, %138 : vector<2x16x16xf32>
    %c8_33 = arith.constant 8 : index
    %140 = memref.load %arg2[%c8_33] : memref<16xf32, #tpu.memory_space<smem>>
    %141 = vector.extract_strided_slice %2 {offsets = [0, 2, 0], sizes = [2, 16, 16], strides = [1, 1, 1]} : vector<2x19x19xf32> to vector<2x16x16xf32>
    %142 = vector.broadcast %140 : f32 to vector<2x16x16xf32>
    %143 = arith.mulf %142, %141 : vector<2x16x16xf32>
    %144 = arith.addf %139, %143 : vector<2x16x16xf32>
    %c9 = arith.constant 9 : index
    %145 = memref.load %arg2[%c9] : memref<16xf32, #tpu.memory_space<smem>>
    %146 = vector.extract_strided_slice %2 {offsets = [0, 2, 1], sizes = [2, 16, 16], strides = [1, 1, 1]} : vector<2x19x19xf32> to vector<2x16x16xf32>
    %147 = vector.broadcast %145 : f32 to vector<2x16x16xf32>
    %148 = arith.mulf %147, %146 : vector<2x16x16xf32>
    %149 = arith.addf %144, %148 : vector<2x16x16xf32>
    %c10 = arith.constant 10 : index
    %150 = memref.load %arg2[%c10] : memref<16xf32, #tpu.memory_space<smem>>
    %151 = vector.extract_strided_slice %2 {offsets = [0, 2, 2], sizes = [2, 16, 16], strides = [1, 1, 1]} : vector<2x19x19xf32> to vector<2x16x16xf32>
    %152 = vector.broadcast %150 : f32 to vector<2x16x16xf32>
    %153 = arith.mulf %152, %151 : vector<2x16x16xf32>
    %154 = arith.addf %149, %153 : vector<2x16x16xf32>
    %c11 = arith.constant 11 : index
    %155 = memref.load %arg2[%c11] : memref<16xf32, #tpu.memory_space<smem>>
    %156 = vector.extract_strided_slice %2 {offsets = [0, 2, 3], sizes = [2, 16, 16], strides = [1, 1, 1]} : vector<2x19x19xf32> to vector<2x16x16xf32>
    %157 = vector.broadcast %155 : f32 to vector<2x16x16xf32>
    %158 = arith.mulf %157, %156 : vector<2x16x16xf32>
    %159 = arith.addf %154, %158 : vector<2x16x16xf32>
    %c12 = arith.constant 12 : index
    %160 = memref.load %arg2[%c12] : memref<16xf32, #tpu.memory_space<smem>>
    %161 = vector.extract_strided_slice %2 {offsets = [0, 3, 0], sizes = [2, 16, 16], strides = [1, 1, 1]} : vector<2x19x19xf32> to vector<2x16x16xf32>
    %162 = vector.broadcast %160 : f32 to vector<2x16x16xf32>
    %163 = arith.mulf %162, %161 : vector<2x16x16xf32>
    %164 = arith.addf %159, %163 : vector<2x16x16xf32>
    %c13 = arith.constant 13 : index
    %165 = memref.load %arg2[%c13] : memref<16xf32, #tpu.memory_space<smem>>
    %166 = vector.extract_strided_slice %2 {offsets = [0, 3, 1], sizes = [2, 16, 16], strides = [1, 1, 1]} : vector<2x19x19xf32> to vector<2x16x16xf32>
    %167 = vector.broadcast %165 : f32 to vector<2x16x16xf32>
    %168 = arith.mulf %167, %166 : vector<2x16x16xf32>
    %169 = arith.addf %164, %168 : vector<2x16x16xf32>
    %c14 = arith.constant 14 : index
    %170 = memref.load %arg2[%c14] : memref<16xf32, #tpu.memory_space<smem>>
    %171 = vector.extract_strided_slice %2 {offsets = [0, 3, 2], sizes = [2, 16, 16], strides = [1, 1, 1]} : vector<2x19x19xf32> to vector<2x16x16xf32>
    %172 = vector.broadcast %170 : f32 to vector<2x16x16xf32>
    %173 = arith.mulf %172, %171 : vector<2x16x16xf32>
    %174 = arith.addf %169, %173 : vector<2x16x16xf32>
    %c15 = arith.constant 15 : index
    %175 = memref.load %arg2[%c15] : memref<16xf32, #tpu.memory_space<smem>>
    %176 = vector.extract_strided_slice %2 {offsets = [0, 3, 3], sizes = [2, 16, 16], strides = [1, 1, 1]} : vector<2x19x19xf32> to vector<2x16x16xf32>
    %177 = vector.broadcast %175 : f32 to vector<2x16x16xf32>
    %178 = arith.mulf %177, %176 : vector<2x16x16xf32>
    %179 = arith.addf %174, %178 : vector<2x16x16xf32>
    %cst_34 = arith.constant 0.000000e+00 : f32
    %180 = vector.broadcast %cst_34 : f32 to vector<2x16x16xf32>
    %181 = arith.maximumf %179, %180 : vector<2x16x16xf32>
    %c0_35 = arith.constant 0 : index
    %c1_36 = arith.constant 1 : index
    %c1_37 = arith.constant 1 : index
    %182 = vector.load %arg5[%c0_35, %c1_36, %c1_37] : memref<2x19x19xf32, #tpu.memory_space<vmem>>, vector<2x16x16xf32>
    tpu.vector_store %arg5[%c0_35, %c1_36, %c1_37], %181 {strides = array<i32>} : memref<2x19x19xf32, #tpu.memory_space<vmem>>, vector<2x16x16xf32>,
    %c0_38 = arith.constant 0 : index
    %c0_39 = arith.constant 0 : index
    %c0_40 = arith.constant 0 : index
    %183 = vector.load %arg5[%c0_38, %c0_39, %c0_40] : memref<2x19x19xf32, #tpu.memory_space<vmem>>, vector<2x19x19xf32>
    %c0_41 = arith.constant 0 : index
    %184 = memref.load %arg2[%c0_41] : memref<16xf32, #tpu.memory_space<smem>>
    %185 = vector.extract_strided_slice %183 {offsets = [0, 0, 0], sizes = [2, 16, 16], strides = [1, 1, 1]} : vector<2x19x19xf32> to vector<2x16x16xf32>
    %186 = vector.broadcast %184 : f32 to vector<2x16x16xf32>
    %187 = arith.mulf %186, %185 : vector<2x16x16xf32>
    %188 = arith.addf %98, %187 : vector<2x16x16xf32>
    %c1_42 = arith.constant 1 : index
    %189 = memref.load %arg2[%c1_42] : memref<16xf32, #tpu.memory_space<smem>>
    %190 = vector.extract_strided_slice %183 {offsets = [0, 0, 1], sizes = [2, 16, 16], strides = [1, 1, 1]} : vector<2x19x19xf32> to vector<2x16x16xf32>
    %191 = vector.broadcast %189 : f32 to vector<2x16x16xf32>
    %192 = arith.mulf %191, %190 : vector<2x16x16xf32>
    %193 = arith.addf %188, %192 : vector<2x16x16xf32>
    %c2_43 = arith.constant 2 : index
    %194 = memref.load %arg2[%c2_43] : memref<16xf32, #tpu.memory_space<smem>>
    %195 = vector.extract_strided_slice %183 {offsets = [0, 0, 2], sizes = [2, 16, 16], strides = [1, 1, 1]} : vector<2x19x19xf32> to vector<2x16x16xf32>
    %196 = vector.broadcast %194 : f32 to vector<2x16x16xf32>
    %197 = arith.mulf %196, %195 : vector<2x16x16xf32>
    %198 = arith.addf %193, %197 : vector<2x16x16xf32>
    %c3_44 = arith.constant 3 : index
    %199 = memref.load %arg2[%c3_44] : memref<16xf32, #tpu.memory_space<smem>>
    %200 = vector.extract_strided_slice %183 {offsets = [0, 0, 3], sizes = [2, 16, 16], strides = [1, 1, 1]} : vector<2x19x19xf32> to vector<2x16x16xf32>
    %201 = vector.broadcast %199 : f32 to vector<2x16x16xf32>
    %202 = arith.mulf %201, %200 : vector<2x16x16xf32>
    %203 = arith.addf %198, %202 : vector<2x16x16xf32>
    %c4_45 = arith.constant 4 : index
    %204 = memref.load %arg2[%c4_45] : memref<16xf32, #tpu.memory_space<smem>>
    %205 = vector.extract_strided_slice %183 {offsets = [0, 1, 0], sizes = [2, 16, 16], strides = [1, 1, 1]} : vector<2x19x19xf32> to vector<2x16x16xf32>
    %206 = vector.broadcast %204 : f32 to vector<2x16x16xf32>
    %207 = arith.mulf %206, %205 : vector<2x16x16xf32>
    %208 = arith.addf %203, %207 : vector<2x16x16xf32>
    %c5_46 = arith.constant 5 : index
    %209 = memref.load %arg2[%c5_46] : memref<16xf32, #tpu.memory_space<smem>>
    %210 = vector.extract_strided_slice %183 {offsets = [0, 1, 1], sizes = [2, 16, 16], strides = [1, 1, 1]} : vector<2x19x19xf32> to vector<2x16x16xf32>
    %211 = vector.broadcast %209 : f32 to vector<2x16x16xf32>
    %212 = arith.mulf %211, %210 : vector<2x16x16xf32>
    %213 = arith.addf %208, %212 : vector<2x16x16xf32>
    %c6_47 = arith.constant 6 : index
    %214 = memref.load %arg2[%c6_47] : memref<16xf32, #tpu.memory_space<smem>>
    %215 = vector.extract_strided_slice %183 {offsets = [0, 1, 2], sizes = [2, 16, 16], strides = [1, 1, 1]} : vector<2x19x19xf32> to vector<2x16x16xf32>
    %216 = vector.broadcast %214 : f32 to vector<2x16x16xf32>
    %217 = arith.mulf %216, %215 : vector<2x16x16xf32>
    %218 = arith.addf %213, %217 : vector<2x16x16xf32>
    %c7_48 = arith.constant 7 : index
    %219 = memref.load %arg2[%c7_48] : memref<16xf32, #tpu.memory_space<smem>>
    %220 = vector.extract_strided_slice %183 {offsets = [0, 1, 3], sizes = [2, 16, 16], strides = [1, 1, 1]} : vector<2x19x19xf32> to vector<2x16x16xf32>
    %221 = vector.broadcast %219 : f32 to vector<2x16x16xf32>
    %222 = arith.mulf %221, %220 : vector<2x16x16xf32>
    %223 = arith.addf %218, %222 : vector<2x16x16xf32>
    %c8_49 = arith.constant 8 : index
    %224 = memref.load %arg2[%c8_49] : memref<16xf32, #tpu.memory_space<smem>>
    %225 = vector.extract_strided_slice %183 {offsets = [0, 2, 0], sizes = [2, 16, 16], strides = [1, 1, 1]} : vector<2x19x19xf32> to vector<2x16x16xf32>
    %226 = vector.broadcast %224 : f32 to vector<2x16x16xf32>
    %227 = arith.mulf %226, %225 : vector<2x16x16xf32>
    %228 = arith.addf %223, %227 : vector<2x16x16xf32>
    %c9_50 = arith.constant 9 : index
    %229 = memref.load %arg2[%c9_50] : memref<16xf32, #tpu.memory_space<smem>>
    %230 = vector.extract_strided_slice %183 {offsets = [0, 2, 1], sizes = [2, 16, 16], strides = [1, 1, 1]} : vector<2x19x19xf32> to vector<2x16x16xf32>
    %231 = vector.broadcast %229 : f32 to vector<2x16x16xf32>
    %232 = arith.mulf %231, %230 : vector<2x16x16xf32>
    %233 = arith.addf %228, %232 : vector<2x16x16xf32>
    %c10_51 = arith.constant 10 : index
    %234 = memref.load %arg2[%c10_51] : memref<16xf32, #tpu.memory_space<smem>>
    %235 = vector.extract_strided_slice %183 {offsets = [0, 2, 2], sizes = [2, 16, 16], strides = [1, 1, 1]} : vector<2x19x19xf32> to vector<2x16x16xf32>
    %236 = vector.broadcast %234 : f32 to vector<2x16x16xf32>
    %237 = arith.mulf %236, %235 : vector<2x16x16xf32>
    %238 = arith.addf %233, %237 : vector<2x16x16xf32>
    %c11_52 = arith.constant 11 : index
    %239 = memref.load %arg2[%c11_52] : memref<16xf32, #tpu.memory_space<smem>>
    %240 = vector.extract_strided_slice %183 {offsets = [0, 2, 3], sizes = [2, 16, 16], strides = [1, 1, 1]} : vector<2x19x19xf32> to vector<2x16x16xf32>
    %241 = vector.broadcast %239 : f32 to vector<2x16x16xf32>
    %242 = arith.mulf %241, %240 : vector<2x16x16xf32>
    %243 = arith.addf %238, %242 : vector<2x16x16xf32>
    %c12_53 = arith.constant 12 : index
    %244 = memref.load %arg2[%c12_53] : memref<16xf32, #tpu.memory_space<smem>>
    %245 = vector.extract_strided_slice %183 {offsets = [0, 3, 0], sizes = [2, 16, 16], strides = [1, 1, 1]} : vector<2x19x19xf32> to vector<2x16x16xf32>
    %246 = vector.broadcast %244 : f32 to vector<2x16x16xf32>
    %247 = arith.mulf %246, %245 : vector<2x16x16xf32>
    %248 = arith.addf %243, %247 : vector<2x16x16xf32>
    %c13_54 = arith.constant 13 : index
    %249 = memref.load %arg2[%c13_54] : memref<16xf32, #tpu.memory_space<smem>>
    %250 = vector.extract_strided_slice %183 {offsets = [0, 3, 1], sizes = [2, 16, 16], strides = [1, 1, 1]} : vector<2x19x19xf32> to vector<2x16x16xf32>
    %251 = vector.broadcast %249 : f32 to vector<2x16x16xf32>
    %252 = arith.mulf %251, %250 : vector<2x16x16xf32>
    %253 = arith.addf %248, %252 : vector<2x16x16xf32>
    %c14_55 = arith.constant 14 : index
    %254 = memref.load %arg2[%c14_55] : memref<16xf32, #tpu.memory_space<smem>>
    %255 = vector.extract_strided_slice %183 {offsets = [0, 3, 2], sizes = [2, 16, 16], strides = [1, 1, 1]} : vector<2x19x19xf32> to vector<2x16x16xf32>
    %256 = vector.broadcast %254 : f32 to vector<2x16x16xf32>
    %257 = arith.mulf %256, %255 : vector<2x16x16xf32>
    %258 = arith.addf %253, %257 : vector<2x16x16xf32>
    %c15_56 = arith.constant 15 : index
    %259 = memref.load %arg2[%c15_56] : memref<16xf32, #tpu.memory_space<smem>>
    %260 = vector.extract_strided_slice %183 {offsets = [0, 3, 3], sizes = [2, 16, 16], strides = [1, 1, 1]} : vector<2x19x19xf32> to vector<2x16x16xf32>
    %261 = vector.broadcast %259 : f32 to vector<2x16x16xf32>
    %262 = arith.mulf %261, %260 : vector<2x16x16xf32>
    %263 = arith.addf %258, %262 : vector<2x16x16xf32>
    %c0_57 = arith.constant 0 : index
    %c0_58 = arith.constant 0 : index
    %c0_59 = arith.constant 0 : index
    %264 = vector.load %arg4[%c0_57, %c0_58, %c0_59] : memref<2x16x16xf32, #tpu.memory_space<vmem>>, vector<2x16x16xf32>
    tpu.vector_store %arg4[%c0_57, %c0_58, %c0_59], %263 {strides = array<i32>} : memref<2x16x16xf32, #tpu.memory_space<vmem>>, vector<2x16x16xf32>,
    return
  }
  func.func @transform_0(%arg0: i32) -> i32 {
    %c0_i32 = arith.constant 0 : i32
    %c0_i32_0 = arith.constant 0 : i32
    return %c0_i32 : i32
  }
  func.func @transform_1(%arg0: i32) -> i32 {
    %c0_i32 = arith.constant 0 : i32
    %c0_i32_0 = arith.constant 0 : i32
    return %c0_i32 : i32
  }
  func.func @transform_2(%arg0: i32) -> (i32, i32, i32) {
    %c0_i32 = arith.constant 0 : i32
    %c0_i32_0 = arith.constant 0 : i32
    %c0_i32_1 = arith.constant 0 : i32
    return %arg0, %c0_i32, %c0_i32_0 : i32, i32, i32
  }
  func.func @transform_3(%arg0: i32) -> (i32, i32, i32) {
    %c0_i32 = arith.constant 0 : i32
    %c0_i32_0 = arith.constant 0 : i32
    %c0_i32_1 = arith.constant 0 : i32
    return %arg0, %c0_i32, %c0_i32_0 : i32, i32, i32
  }
}

</mosaic_0001>

<bundles_post_ra>
// kernel: tpu_custom_call.1
= control target key start
LH: loop header
LB: loop body
LE: loop exit
PB: predicated region body
PF: predicated region fallthrough
CT: control target
= control target key end

     0   :  { %8 = vsyncpa [#allocation5], 0  ;;  %s3106_s0 = inlined_call_operand.vmem [shape: f32[9], index: 0, kind: input, shape index: {}]   ;;  %s3107_s1 = inlined_call_operand.vmem [shape: f32[16], index: 1, kind: input, shape index: {}]   ;;  %s3108_s2 = inlined_call_operand.vmem [shape: f32[2,19,19], index: 2, kind: input, shape index: {}]   ;;  %s3109_s3 = inlined_call_operand.hbm [shape: f32[2,16,16], index: 3, kind: output, shape index: {}]  }
   0x1   :  { %9 = vsyncpa [#allocation7], 0 }
   0x2   :  { %10 = vsyncpa [#allocation4], 0  ;;  %s17_s14 = sshll.u32 %s3106_s0, 4  ;;  %s27_s17 = sshll.u32 %s3107_s1, 4  ;;  %s18_s14 = int_to_ptr.vmem [resolvable:$true] %s17_s14  ;;  %s28_s17 = int_to_ptr.vmem [resolvable:$true] %s27_s17 }
   0x3   :  { %s1863_s18 = scalar_lea.vmem %s18_s14, 16  ;;  %p1868_p1 = scmp.lt.s32.totalorder %s18_s14, %s18_s14 }
   0x4   :  { %p1864_p0 = scmp.ne.s32.totalorder %s18_s14, %s1863_s18  ;;  %p1869_p2 = scmp.lt.s32.totalorder %s1863_s18, %s1863_s18 }
   0x6   :  { %p1870_p3 = por %p1869_p2, %p1868_p1 }
   0x8   :  { %p1871_p4 = pnand %p1870_p3, %p1864_p0 }
   0xa   :  { %1874 = shalt.err (!%p1871_p4)
}
   0xb   :  { %s1913_s19 = smov [#allocation3]   ;;  %s1875_s20 = scalar_lea.vmem %s28_s17, 16 }
   0xc   :  { %20 = dma.vmem_to_smem %s18_s14, 16, %s1913_s19, [#allocation5]  }
   0xd   :  { %p1876_p5 = scmp.ne.s32.totalorder %s28_s17, %s1875_s20  ;;  %p1880_p6 = scmp.lt.s32.totalorder %s28_s17, %s28_s17 }
   0xe   :  { %p1881_p7 = scmp.lt.s32.totalorder %s1875_s20, %s1875_s20 }
  0x10   :  { %p1882_p8 = por %p1881_p7, %p1880_p6 }
  0x12   :  { %p1883_p9 = pnand %p1882_p8, %p1876_p5 }
  0x14   :  { %1886 = shalt.err (!%p1883_p9)
}
  0x15   :  { %s1914_s0 = smov [#allocation6]  }
  0x16   :  { %30 = dma.vmem_to_smem %s28_s17, 16, %s1914_s0, [#allocation7]  }
  0x17   :  { %1907 = dma.done.wait [#allocation5], 16  }
  0x18   :  { %1908 = vsyncadd [#allocation5], 4294967280 }
  0x19   :  { %1909 = dma.done.wait [#allocation7], 16  }
  0x1a   :  { %1910 = vsyncadd [#allocation7], 4294967280 }
  0x1b   :  { %39 = sfence }
  0x1c   :  { %s1801_s1 = sld [smem:[#allocation3 + $0x1]]  ;;  %v1952_v0 = vld [vmem:[%s3108_s2 + $0x18] sm:$0xff]  ;;  %v1957_v1 = vld [vmem:[%s3108_s2] sm:$0xff]  ;;  %v1967_v4 = vld [vmem:[%s3108_s2 + $0x8] sm:$0xff]  ;;  %s1915_s4 = smov 127   ;;  %vm130_vm0 = vcmask 1046528  }
  0x1d   :  { %s1802_s21 = sld [smem:[#allocation3 + $0x2]]  ;;  %v1962_v3 = vld [vmem:[%s3108_s2 + $0x20] sm:$0xff]  ;;  %v1978_v10 = vld [vmem:[%s3108_s2 + $0x10] sm:$0x7]  ;;  %v1990_v17 = vld [vmem:[%s3108_s2 + $0x28] sm:$0x7] }
  0x1e   :  { %s1804_s22 = sld [smem:[#allocation3 + $0x4]]  ;;  %s1916_s10 = smov 126   ;;  %vm243_vm1 = vcmask 1045504   ;;  %vm1065_vm2 = vcmask 1044480   ;;  %vm40_vm3 = vcmask 154624   ;;  %vm43_vm4 = vcmask 149504  }
  0x1f   :  { %s1805_s5 = sld [smem:[#allocation3 + $0x5]]  ;;  %s1917_s19 = smov 125   ;;  %vm362_vm5 = vcmask 138248   ;;  %vm1778_vm6 = vcmask 130048  }
  0x20   :  { %s1807_s11 = sld [smem:[#allocation3 + $0x7]]  ;;  %s1919_s27 = smov 1  }
  0x21   :  { %s1808_s12 = sld [smem:[#allocation3 + $0x8]] }
  0x22   :  { %v65_v2 = vstv %s1801_s1  ;;  %s1817_s13 = sld [smem:[#allocation6 + $0x1]] }
  0x23   :  { %v68_v5 = vmul.f32 %v65_v2, %v1952_v0  ;;  %v66_v6 = vmul.f32 %v65_v2, %v1957_v1  ;;  %v69_v7 = vmul.f32 %v65_v2, %v1962_v3  ;;  %v67_v8 = vmul.f32 %v65_v2, %v1967_v4  ;;  %s1818_s14 = sld [smem:[#allocation6 + $0x2]] }
  0x24   :  { %v91_v9 = vstv %s1802_s21  ;;  %v150_v11 = vstv %s1804_s22  ;;  %s1819_s15 = sld [smem:[#allocation6 + $0x3]] }
  0x25   :  { %78 = vrot.lane.b32.xlu1 %v68_v5, %s1915_s4  ;;  %74 = vrot.lane.b32.xlu0 %v66_v6, %s1915_s4  ;;  %v93_v12 = vmul.f32 %v91_v9, %v1967_v4  ;;  %v92_v13 = vmul.f32 %v91_v9, %v1957_v1  ;;  %v152_v14 = vmul.f32 %v150_v11, %v1967_v4  ;;  %v190_v23 = vstv %s1805_s5  ;;  %s1821_s16 = sld [smem:[#allocation6 + $0x5]] }
  0x26   :  { %v153_v15 = vmul.f32 %v150_v11, %v1978_v10  ;;  %v151_v16 = vmul.f32 %v150_v11, %v1957_v1  ;;  %v95_v18 = vmul.f32 %v91_v9, %v1962_v3  ;;  %v94_v19 = vmul.f32 %v91_v9, %v1952_v0  ;;  %s1822_s17 = sld [smem:[#allocation6 + $0x6]] }
  0x27   :  { %v155_v20 = vmul.f32 %v150_v11, %v1962_v3  ;;  %v156_v21 = vmul.f32 %v150_v11, %v1990_v17  ;;  %v154_v22 = vmul.f32 %v150_v11, %v1952_v0  ;;  %v164_v24 = vrot.slane %v152_v14, 1  ;;  %s1823_s18 = sld [smem:[#allocation6 + $0x7]] }
  0x28   :  { %v166_v25 = vrot.slane %v153_v15, 1  ;;  %v163_v26 = vrot.slane %v151_v16, 1  ;;  %v192_v27 = vmul.f32 %v190_v23, %v1967_v4  ;;  %v193_v31 = vmul.f32 %v190_v23, %v1978_v10  ;;  %s1825_s20 = sld [smem:[#allocation6 + $0x9]] }
  0x29   :  { %80 = vrot.lane.b32.xlu1 %v69_v7, %s1915_s4  ;;  %76 = vrot.lane.b32.xlu0 %v67_v8, %s1915_s4  ;;  %v169_v28 = vrot.slane %v155_v20, 1  ;;  %v171_v29 = vrot.slane %v156_v21, 1  ;;  %v168_v30 = vrot.slane %v154_v22, 1  ;;  %v191_v34 = vmul.f32 %v190_v23, %v1957_v1  ;;  %s1826_s0 = sld [smem:[#allocation6 + $0xa]] }
  0x2a   :  { %v167_v32 = vsel %vm130_vm0, %v164_v24, %v166_v25  ;;  %v165_v33 = vsel %vm130_vm0, %v163_v26, %v164_v24  ;;  %v204_v35 = vrot.slane %v192_v27, 1  ;;  %v206_v38 = vrot.slane %v193_v31, 1  ;;  %s1827_s1 = sld [smem:[#allocation6 + $0xb]] }
  0x2b   :  { %v172_v36 = vsel %vm130_vm0, %v169_v28, %v171_v29  ;;  %v170_v37 = vsel %vm130_vm0, %v168_v30, %v169_v28  ;;  %v195_v39 = vmul.f32 %v190_v23, %v1962_v3  ;;  %v203_v40 = vrot.slane %v191_v34, 1  ;;  %s1829_s21 = sld [smem:[#allocation6 + $0xd]] }
  0x2c   :  { %v196_v41 = vmul.f32 %v190_v23, %v1990_v17  ;;  %v194_v42 = vmul.f32 %v190_v23, %v1952_v0  ;;  %v263_v43 = vstv %s1807_s11  ;;  %v207_v44 = vsel %vm130_vm0, %v204_v35, %v206_v38  ;;  %s1830_s22 = sld [smem:[#allocation6 + $0xe]] }
  0x2d   :  { %102 = vrot.lane.b32.xlu1 %v93_v12, %s1916_s10  ;;  %100 = vrot.lane.b32.xlu0 %v92_v13, %s1916_s10  ;;  %v209_v45 = vrot.slane %v195_v39, 1  ;;  %v265_v46 = vmul.f32 %v263_v43, %v1967_v4  ;;  %v266_v47 = vmul.f32 %v263_v43, %v1978_v10  ;;  %v205_v48 = vsel %vm130_vm0, %v203_v40, %v204_v35  ;;  %s1803_s23 = sld [smem:[#allocation3 + $0x3]] }
  0x2e   :  { %v211_v49 = vrot.slane %v196_v41, 1  ;;  %v208_v50 = vrot.slane %v194_v42, 1  ;;  %v264_v51 = vmul.f32 %v263_v43, %v1957_v1  ;;  %v268_v52 = vmul.f32 %v263_v43, %v1962_v3  ;;  %s54_s24 = sld [smem:[#allocation3]] }
  0x2f   :  { %v269_v53 = vmul.f32 %v263_v43, %v1990_v17  ;;  %v277_v54 = vrot.slane %v265_v46, 2  ;;  %v279_v55 = vrot.slane %v266_v47, 2  ;;  %v267_v56 = vmul.f32 %v263_v43, %v1952_v0  ;;  %s1806_s25 = sld [smem:[#allocation3 + $0x6]] }
  0x30   :  { %v212_v57 = vsel %vm130_vm0, %v209_v45, %v211_v49  ;;  %v210_v58 = vsel %vm130_vm0, %v208_v50, %v209_v45  ;;  %v276_v59 = vrot.slane %v264_v51, 2  ;;  %v303_v60 = vstv %s1808_s12  ;;  %s2238_s26 = sld [smem:[#allocation6 + $0xf]] }
  0x31   :  { %106 = vrot.lane.b32.xlu1 %v95_v18, %s1916_s10  ;;  %104 = vrot.lane.b32.xlu0 %v94_v19, %s1916_s10  ;;  %v282_v61 = vrot.slane %v268_v52, 2  ;;  %v284_v62 = vrot.slane %v269_v53, 2  ;;  %v280_v63 = vsel %vm243_vm1, %v277_v54, %v279_v55  ;;  %v281_v2 = vrot.slane %v267_v56, 2  ;;  %s659_s28 = sld [smem:[#allocation6]] }
  0x32   :  { %v278_v5 = vsel %vm243_vm1, %v276_v59, %v277_v54  ;;  %v305_v6 = vmul.f32 %v303_v60, %v1967_v4  ;;  %v306_v7 = vmul.f32 %v303_v60, %v1978_v10  ;;  %v304_v8 = vmul.f32 %v303_v60, %v1957_v1  ;;  %s1820_s29 = sld [smem:[#allocation6 + $0x4]] }
  0x33   :  { %v285_v9 = vsel %vm243_vm1, %v282_v61, %v284_v62  ;;  %v283_v11 = vsel %vm243_vm1, %v281_v2, %v282_v61  ;;  %v308_v12 = vmul.f32 %v303_v60, %v1962_v3  ;;  %v309_v13 = vmul.f32 %v303_v60, %v1990_v17  ;;  %s1824_s30 = sld [smem:[#allocation6 + $0x8]] }
  0x34   :  { %v317_v14 = vrot.slane %v305_v6, 2  ;;  %v319_v15 = vrot.slane %v306_v7, 2  ;;  %v316_v16 = vrot.slane %v304_v8, 2  ;;  %v307_v18 = vmul.f32 %v303_v60, %v1952_v0  ;;  %s1828_s7 = sld [smem:[#allocation6 + $0xc]] }
  0x35   :  { %175 = vrot.lane.b32.xlu1 %v167_v32, %s1915_s4  ;;  %173 = vrot.lane.b32.xlu0 %v165_v33, %s1915_s4  ;;  %v322_v19 = vrot.slane %v308_v12, 2  ;;  %v324_v22 = vrot.slane %v309_v13, 2  ;;  %v670_v26 = vstv %s1817_s13  ;;  %v696_v31 = vstv %s1818_s14  ;;  %s2525_s5 = sld [smem:[#allocation6 + $0xb]] }
  0x36   :  { %v320_v20 = vsel %vm243_vm1, %v317_v14, %v319_v15  ;;  %v318_v21 = vsel %vm243_vm1, %v316_v16, %v317_v14  ;;  %v321_v23 = vrot.slane %v307_v18, 2  ;;  %v671_v27 = vmul.f32 %v670_v26, %v1957_v1  ;;  %s2537_s6 = sld [smem:[#allocation6 + $0xd]] }
  0x37   :  { %v325_v24 = vsel %vm243_vm1, %v322_v19, %v324_v22  ;;  %v672_v28 = vmul.f32 %v670_v26, %v1967_v4  ;;  %v673_v29 = vmul.f32 %v670_v26, %v1952_v0  ;;  %v674_v30 = vmul.f32 %v670_v26, %v1962_v3  ;;  %s2549_s8 = sld [smem:[#allocation6 + $0xf]] }
  0x38   :  { %v323_v25 = vsel %vm243_vm1, %v321_v23, %v322_v19  ;;  %v697_v32 = vmul.f32 %v696_v31, %v1957_v1  ;;  %v698_v33 = vmul.f32 %v696_v31, %v1967_v4  ;;  %v699_v34 = vmul.f32 %v696_v31, %v1952_v0  ;;  %s2560_s9 = sld [smem:[#allocation6]] }
  0x39   :  { %179 = vrot.lane.b32.xlu1 %v172_v36, %s1915_s4  ;;  %177 = vrot.lane.b32.xlu0 %v170_v37, %s1915_s4  ;;  %v700_v35 = vmul.f32 %v696_v31, %v1962_v3  ;;  %v722_v36 = vstv %s1819_s15  ;;  %v780_v37 = vstv %s1821_s16  ;;  %s2578_s11 = sld [smem:[#allocation6 + $0x4]] }
  0x3a   :  { %v723_v38 = vmul.f32 %v722_v36, %v1957_v1  ;;  %v724_v39 = vmul.f32 %v722_v36, %v1967_v4  ;;  %v781_v40 = vmul.f32 %v780_v37, %v1957_v1  ;;  %v782_v41 = vmul.f32 %v780_v37, %v1967_v4  ;;  %s2628_s12 = sld [smem:[#allocation6 + $0x8]] }
  0x3b   :  { %v783_v42 = vmul.f32 %v780_v37, %v1978_v10  ;;  %v725_v43 = vmul.f32 %v722_v36, %v1952_v0  ;;  %v784_v45 = vmul.f32 %v780_v37, %v1952_v0  ;;  %v785_v46 = vmul.f32 %v780_v37, %v1962_v3  ;;  %s2777_s13 = sld [smem:[#allocation6 + $0xc]] }
  0x3c   :  { %v786_v47 = vmul.f32 %v780_v37, %v1990_v17  ;;  %v794_v49 = vrot.slane %v782_v41, 1  ;;  %v820_v51 = vstv %s1822_s17  ;;  %v860_v60 = vstv %s1823_s18 }
  0x3d   :  { %215 = vrot.lane.b32.xlu1 %v207_v44, %s1916_s10  ;;  %213 = vrot.lane.b32.xlu0 %v205_v48, %s1916_s10  ;;  %v726_v44 = vmul.f32 %v722_v36, %v1962_v3  ;;  %v793_v48 = vrot.slane %v781_v40, 1  ;;  %v796_v50 = vrot.slane %v783_v42, 1  ;;  %v798_v52 = vrot.slane %v784_v45, 1 }
  0x3e   :  { %v799_v53 = vrot.slane %v785_v46, 1  ;;  %v821_v54 = vmul.f32 %v820_v51, %v1957_v1  ;;  %v822_v55 = vmul.f32 %v820_v51, %v1967_v4  ;;  %v823_v59 = vmul.f32 %v820_v51, %v1978_v10 }
  0x3f   :  { %v795_v56 = vsel %vm130_vm0, %v793_v48, %v794_v49  ;;  %v824_v2 = vmul.f32 %v820_v51, %v1952_v0  ;;  %v825_v7 = vmul.f32 %v820_v51, %v1962_v3  ;;  %v826_v8 = vmul.f32 %v820_v51, %v1990_v17 }
  0x40   :  { %v800_v61 = vsel %vm130_vm0, %v798_v52, %v799_v53  ;;  %v833_v62 = vrot.slane %v821_v54, 1  ;;  %v836_v6 = vrot.slane %v823_v59, 1  ;;  %v861_v12 = vmul.f32 %v860_v60, %v1957_v1 }
  0x41   :  { %219 = vrot.lane.b32.xlu1 %v212_v57, %s1916_s10  ;;  %217 = vrot.lane.b32.xlu0 %v210_v58, %s1916_s10  ;;  %v797_v57 = vsel %vm130_vm0, %v794_v49, %v796_v50  ;;  %v801_v58 = vrot.slane %v786_v47, 1  ;;  %v862_v13 = vmul.f32 %v860_v60, %v1967_v4  ;;  %v839_v15 = vrot.slane %v825_v7, 1 }
  0x42   :  { %v841_v16 = vrot.slane %v826_v8, 1  ;;  %v863_v18 = vmul.f32 %v860_v60, %v1978_v10  ;;  %v864_v19 = vmul.f32 %v860_v60, %v1952_v0  ;;  %v865_v22 = vmul.f32 %v860_v60, %v1962_v3 }
  0x43   :  { %v866_v23 = vmul.f32 %v860_v60, %v1990_v17 }
  0x44   :  { %v876_v26 = vrot.slane %v863_v18, 1 }
  0x45   :  { %288 = vrot.lane.b32.xlu1 %v280_v63, %s1915_s4  ;;  %286 = vrot.lane.b32.xlu0 %v278_v5, %s1915_s4  ;;  %v834_v63 = vrot.slane %v822_v55, 1  ;;  %v802_v5 = vsel %vm130_vm0, %v799_v53, %v801_v58  ;;  %v881_v31 = vrot.slane %v866_v23, 1 }
  0x47   :  { %v837_v14 = vsel %vm130_vm0, %v834_v63, %v836_v6 }
  0x49   :  { %292 = vrot.lane.b32.xlu1 %v285_v9, %s1915_s4  ;;  %290 = vrot.lane.b32.xlu0 %v283_v11, %s1915_s4  ;;  %v835_v9 = vsel %vm130_vm0, %v833_v62, %v834_v63  ;;  %v838_v11 = vrot.slane %v824_v2, 1 }
  0x4d   :  { %328 = vrot.lane.b32.xlu1 %v320_v20, %s1916_s10  ;;  %326 = vrot.lane.b32.xlu0 %v318_v21, %s1916_s10  ;;  %v873_v20 = vrot.slane %v861_v12, 1  ;;  %v874_v21 = vrot.slane %v862_v13, 1 }
  0x51   :  { %332 = vrot.lane.b32.xlu1 %v325_v24, %s1916_s10  ;;  %330 = vrot.lane.b32.xlu0 %v323_v25, %s1916_s10  ;;  %v840_v24 = vsel %vm130_vm0, %v838_v11, %v839_v15  ;;  %v842_v25 = vsel %vm130_vm0, %v839_v15, %v841_v16 }
  0x55   :  { %679 = vrot.lane.b32.xlu1 %v671_v27, %s1915_s4  ;;  %681 = vrot.lane.b32.xlu0 %v672_v28, %s1915_s4  ;;  %v932_v27 = vstv %s1825_s20  ;;  %v875_v28 = vsel %vm130_vm0, %v873_v20, %v874_v21  ;;  %v1085_v20 = vstv %s1829_s21  ;;  %s1810_s20 = sld [smem:[#allocation3 + $0x2]] }
  0x56   :  { %v936_v36 = vmul.f32 %v932_v27, %v1952_v0  ;;  %v937_v37 = vmul.f32 %v932_v27, %v1962_v3  ;;  %v938_v40 = vmul.f32 %v932_v27, %v1990_v17  ;;  %s1815_s21 = sld [smem:[#allocation3 + $0x7]] }
  0x58   :  { %v950_v45 = vrot.slane %v936_v36, 2  ;;  %v951_v46 = vrot.slane %v937_v37, 2  ;;  %v953_v47 = vrot.slane %v938_v40, 2  ;;  %v1125_v37 = vstv %s1830_s22  ;;  %s1816_s22 = sld [smem:[#allocation3 + $0x8]] }
  0x59   :  { %683 = vrot.lane.b32.xlu1 %v673_v29, %s1915_s4  ;;  %685 = vrot.lane.b32.xlu0 %v674_v30, %s1915_s4  ;;  %v878_v29 = vrot.slane %v864_v19, 1  ;;  %v879_v30 = vrot.slane %v865_v22, 1 }
  0x5a   :  { %v952_v53 = vsel %vm243_vm1, %v950_v45, %v951_v46  ;;  %v954_v54 = vsel %vm243_vm1, %v951_v46, %v953_v47  ;;  %v1128_v47 = vmul.f32 %v1125_v37, %v1978_v10 }
  0x5d   :  { %705 = vrot.lane.b32.xlu1 %v697_v32, %s1916_s10  ;;  %707 = vrot.lane.b32.xlu0 %v698_v33, %s1916_s10  ;;  %v877_v32 = vsel %vm130_vm0, %v874_v21, %v876_v26  ;;  %v933_v33 = vmul.f32 %v932_v27, %v1957_v1  ;;  %v1086_v26 = vmul.f32 %v1085_v20, %v1957_v1 }
  0x5f   :  { %v945_v41 = vrot.slane %v933_v33, 2  ;;  %v1091_v33 = vmul.f32 %v1085_v20, %v1990_v17 }
  0x61   :  { %709 = vrot.lane.b32.xlu1 %v699_v34, %s1916_s10  ;;  %711 = vrot.lane.b32.xlu0 %v700_v35, %s1916_s10  ;;  %v934_v34 = vmul.f32 %v932_v27, %v1967_v4  ;;  %v935_v35 = vmul.f32 %v932_v27, %v1978_v10  ;;  %v1087_v27 = vmul.f32 %v1085_v20, %v1967_v4 }
  0x63   :  { %v946_v42 = vrot.slane %v934_v34, 2  ;;  %v1098_v34 = vrot.slane %v1086_v26, 3 }
  0x65   :  { %731 = vrot.lane.b32.xlu1 %v723_v38, %s1917_s19  ;;  %733 = vrot.lane.b32.xlu0 %v724_v39, %s1917_s19  ;;  %v880_v38 = vsel %vm130_vm0, %v878_v29, %v879_v30  ;;  %v882_v39 = vsel %vm130_vm0, %v879_v30, %v881_v31  ;;  %v947_v50 = vsel %vm243_vm1, %v945_v41, %v946_v42 }
  0x66   :  { %v1089_v30 = vmul.f32 %v1085_v20, %v1952_v0 }
  0x68   :  { %v1103_v40 = vrot.slane %v1089_v30, 3 }
  0x69   :  { %735 = vrot.lane.b32.xlu1 %v725_v43, %s1917_s19  ;;  %737 = vrot.lane.b32.xlu0 %v726_v44, %s1917_s19  ;;  %v948_v43 = vrot.slane %v935_v35, 2  ;;  %v972_v44 = vstv %s1826_s0  ;;  %v1099_v35 = vrot.slane %v1087_v27, 3  ;;  %s1812_s0 = sld [smem:[#allocation3 + $0x4]] }
  0x6a   :  { %v973_v48 = vmul.f32 %v972_v44, %v1957_v1  ;;  %v974_v49 = vmul.f32 %v972_v44, %v1967_v4  ;;  %v975_v52 = vmul.f32 %v972_v44, %v1978_v10  ;;  %v977_v59 = vmul.f32 %v972_v44, %v1962_v3 }
  0x6b   :  { %v949_v51 = vsel %vm243_vm1, %v946_v42, %v948_v43  ;;  %v978_v60 = vmul.f32 %v972_v44, %v1990_v17  ;;  %v1106_v42 = vrot.slane %v1091_v33, 3  ;;  %v1126_v43 = vmul.f32 %v1125_v37, %v1957_v1 }
  0x6c   :  { %v985_v55 = vrot.slane %v973_v48, 2  ;;  %v988_v58 = vrot.slane %v975_v52, 2  ;;  %v991_v7 = vrot.slane %v977_v59, 2  ;;  %v1100_v45 = vsel %vm1065_vm2, %v1098_v34, %v1099_v35 }
  0x6d   :  { %803 = vrot.lane.b32.xlu1 %v795_v56, %s1915_s4  ;;  %805 = vrot.lane.b32.xlu0 %v797_v57, %s1915_s4  ;;  %v986_v56 = vrot.slane %v974_v49, 2  ;;  %v976_v57 = vmul.f32 %v972_v44, %v1952_v0  ;;  %v993_v8 = vrot.slane %v978_v60, 2  ;;  %v1127_v44 = vmul.f32 %v1125_v37, %v1967_v4 }
  0x6e   :  { %v1138_v52 = vrot.slane %v1126_v43, 3 }
  0x6f   :  { %v987_v62 = vsel %vm243_vm1, %v985_v55, %v986_v56  ;;  %v990_v63 = vrot.slane %v976_v57, 2  ;;  %v989_v6 = vsel %vm243_vm1, %v986_v56, %v988_v58  ;;  %v994_v18 = vsel %vm243_vm1, %v991_v7, %v993_v8 }
  0x70   :  { %v1129_v55 = vmul.f32 %v1125_v37, %v1952_v0  ;;  %v1130_v56 = vmul.f32 %v1125_v37, %v1962_v3  ;;  %v1131_v57 = vmul.f32 %v1125_v37, %v1990_v17 }
  0x71   :  { %807 = vrot.lane.b32.xlu1 %v800_v61, %s1915_s4  ;;  %809 = vrot.lane.b32.xlu0 %v802_v5, %s1915_s4  ;;  %v1012_v61 = vstv %s1827_s1  ;;  %v992_v16 = vsel %vm243_vm1, %v990_v63, %v991_v7  ;;  %v2189_v7 = vstv %s1803_s23  ;;  %s1813_s1 = sld [smem:[#allocation3 + $0x5]] }
  0x72   :  { %v1013_v2 = vmul.f32 %v1012_v61, %v1957_v1  ;;  %v1014_v5 = vmul.f32 %v1012_v61, %v1967_v4  ;;  %v1016_v11 = vmul.f32 %v1012_v61, %v1952_v0  ;;  %v1017_v12 = vmul.f32 %v1012_v61, %v1962_v3  ;;  %s1832_s23 = sld [smem:[#allocation6 + $0x1]] }
  0x73   :  { %v1018_v15 = vmul.f32 %v1012_v61, %v1990_v17  ;;  %v1144_v63 = vrot.slane %v1130_v56, 3 }
  0x74   :  { %v1025_v13 = vrot.slane %v1013_v2, 2  ;;  %v1030_v21 = vrot.slane %v1016_v11, 2  ;;  %v1031_v22 = vrot.slane %v1017_v12, 2  ;;  %v1146_v2 = vrot.slane %v1131_v57, 3 }
  0x75   :  { %843 = vrot.lane.b32.xlu1 %v835_v9, %s1916_s10  ;;  %845 = vrot.lane.b32.xlu0 %v837_v14, %s1916_s10  ;;  %v1015_v9 = vmul.f32 %v1012_v61, %v1978_v10  ;;  %v1026_v14 = vrot.slane %v1014_v5, 2  ;;  %v2193_v11 = vstv %s54_s24  ;;  %s2489_s24 = sld [smem:[#allocation6 + $0x2]] }
  0x76   :  { %v1032_v29 = vsel %vm243_vm1, %v1030_v21, %v1031_v22  ;;  %v123_v21 = vmul.f32 %v2189_v7, %v1990_v17  ;;  %v58_v26 = vmul.f32 %v2193_v11, %v1952_v0  ;;  %v59_v27 = vmul.f32 %v2193_v11, %v1962_v3 }
  0x77   :  { %v1028_v19 = vrot.slane %v1015_v9, 2  ;;  %v1027_v23 = vsel %vm243_vm1, %v1025_v13, %v1026_v14  ;;  %v1147_v9 = vsel %vm1065_vm2, %v1144_v63, %v1146_v2 }
  0x79   :  { %847 = vrot.lane.b32.xlu1 %v840_v24, %s1916_s10  ;;  %849 = vrot.lane.b32.xlu0 %v842_v25, %s1916_s10  ;;  %v1033_v24 = vrot.slane %v1018_v15, 2  ;;  %v1029_v25 = vsel %vm243_vm1, %v1026_v14, %v1028_v19  ;;  %v119_v14 = vmul.f32 %v2189_v7, %v1967_v4  ;;  %v120_v15 = vmul.f32 %v2189_v7, %v1978_v10 }
  0x7a   :  { %v57_v19 = vmul.f32 %v2193_v11, %v1967_v4 }
  0x7b   :  { %v1034_v31 = vsel %vm243_vm1, %v1031_v22, %v1033_v24 }
  0x7d   :  { %883 = vrot.lane.b32.xlu1 %v875_v28, %s1917_s19  ;;  %885 = vrot.lane.b32.xlu0 %v877_v32, %s1917_s19  ;;  %v1088_v28 = vmul.f32 %v1085_v20, %v1978_v10  ;;  %v1090_v32 = vmul.f32 %v1085_v20, %v1962_v3  ;;  %v122_v20 = vmul.f32 %v2189_v7, %v1962_v3 }
  0x7f   :  { %v1101_v36 = vrot.slane %v1088_v28, 3  ;;  %v1104_v41 = vrot.slane %v1090_v32, 3  ;;  %v132_v28 = vrot.slane %v119_v14, 1 }
  0x81   :  { %887 = vrot.lane.b32.xlu1 %v880_v38, %s1917_s19  ;;  %889 = vrot.lane.b32.xlu0 %v882_v39, %s1917_s19  ;;  %v1102_v46 = vsel %vm1065_vm2, %v1099_v35, %v1101_v36  ;;  %v137_v35 = vrot.slane %v122_v20, 1  ;;  %v139_v36 = vrot.slane %v123_v21, 1 }
  0x85   :  { %955 = vrot.lane.b32.xlu1 %v947_v50, %s1915_s4  ;;  %957 = vrot.lane.b32.xlu0 %v949_v51, %s1915_s4  ;;  %v1105_v50 = vsel %vm1065_vm2, %v1103_v40, %v1104_v41  ;;  %v1107_v51 = vsel %vm1065_vm2, %v1104_v41, %v1106_v42 }
  0x89   :  { %959 = vrot.lane.b32.xlu1 %v952_v53, %s1915_s4  ;;  %961 = vrot.lane.b32.xlu0 %v954_v54, %s1915_s4  ;;  %v1139_v53 = vrot.slane %v1127_v44, 3  ;;  %v1141_v54 = vrot.slane %v1128_v47, 3 }
  0x8b   :  { %v1140_v60 = vsel %vm1065_vm2, %v1138_v52, %v1139_v53  ;;  %v1142_v61 = vsel %vm1065_vm2, %v1139_v53, %v1141_v54  ;;  %v140_v52 = vsel %vm130_vm0, %v137_v35, %v139_v36 }
  0x8d   :  { %995 = vrot.lane.b32.xlu1 %v987_v62, %s1916_s10  ;;  %997 = vrot.lane.b32.xlu0 %v989_v6, %s1916_s10  ;;  %v1143_v62 = vrot.slane %v1129_v55, 3 }
  0x8f   :  { %v1145_v8 = vsel %vm1065_vm2, %v1143_v62, %v1144_v63  ;;  %v1918_v63 = vmov 0.0  }
  0x90   :  { %42 = vst.msk [vmem:[#allocation2 + $0x8] sm:$0xff] %vm40_vm3, %v1918_v63  ;;  %41 = vst.msk [vmem:[#allocation2] sm:$0xff] %vm40_vm3, %v1918_v63 }
  0x91   :  { %999 = vrot.lane.b32.xlu1 %v992_v16, %s1916_s10  ;;  %1001 = vrot.lane.b32.xlu0 %v994_v18, %s1916_s10  ;;  %v118_v16 = vmul.f32 %v2189_v7, %v1957_v1  ;;  %v56_v18 = vmul.f32 %v2193_v11, %v1957_v1  ;;  %44 = vst.msk [vmem:[#allocation2 + $0x10] sm:$0x7] %vm43_vm4, %v1918_v63  ;;  %47 = vst.msk [vmem:[#allocation2 + $0x28] sm:$0x7] %vm43_vm4, %v1918_v63 }
  0x92   :  { %45 = vst.msk [vmem:[#allocation2 + $0x18] sm:$0xff] %vm40_vm3, %v1918_v63  ;;  %46 = vst.msk [vmem:[#allocation2 + $0x20] sm:$0xff] %vm40_vm3, %v1918_v63 }
  0x93   :  { %v131_v30 = vrot.slane %v118_v16, 1 }
  0x95   :  { %1035 = vrot.lane.b32.xlu1 %v1027_v23, %s1917_s19  ;;  %1037 = vrot.lane.b32.xlu0 %v1029_v25, %s1917_s19  ;;  %v121_v23 = vmul.f32 %v2189_v7, %v1952_v0  ;;  %v2213_v25 = vstv %s1806_s25  ;;  %s2491_s25 = sld [smem:[#allocation6 + $0x3]] }
  0x96   :  { %v232_v33 = vmul.f32 %v2213_v25, %v1967_v4  ;;  %v233_v34 = vmul.f32 %v2213_v25, %v1978_v10  ;;  %v236_v56 = vmul.f32 %v2213_v25, %v1990_v17  ;;  %v234_v57 = vmul.f32 %v2213_v25, %v1952_v0 }
  0x97   :  { %v2163_v38 = vpop.permute.xlu1 %78  ;;  %v2165_v39 = vpop.permute.xlu0 %74  ;;  %v136_v37 = vrot.slane %v121_v23, 1 }
  0x98   :  { %v88_v47 = vadd.f32 %v2163_v38, %v58_v26 }
  0x99   :  { %1039 = vrot.lane.b32.xlu1 %v1032_v29, %s1917_s19  ;;  %1041 = vrot.lane.b32.xlu0 %v1034_v31, %s1917_s19  ;;  %v134_v29 = vrot.slane %v120_v15, 1  ;;  %v86_v31 = vadd.f32 %v2165_v39, %v56_v18  ;;  %v231_v39 = vmul.f32 %v2213_v25, %v1957_v1  ;;  %v138_v53 = vsel %vm130_vm0, %v136_v37, %v137_v35 }
  0x9a   :  { %v249_v18 = vrot.slane %v234_v57, 2 }
  0x9b   :  { %v2174_v48 = vpop.permute.xlu1 %80  ;;  %v77_v49 = vpop.permute.xlu0 %76  ;;  %v135_v44 = vsel %vm130_vm0, %v132_v28, %v134_v29 }
  0x9c   :  { %v87_v32 = vadd.f32 %v77_v49, %v57_v19  ;;  %v89_v49 = vadd.f32 %v2174_v48, %v59_v27 }
  0x9d   :  { %1108 = vrot.lane.b32.xlu1 %v1100_v45, %s1915_s4  ;;  %1110 = vrot.lane.b32.xlu0 %v1102_v46, %s1915_s4  ;;  %v133_v45 = vsel %vm130_vm0, %v131_v30, %v132_v28  ;;  %v235_v46 = vmul.f32 %v2213_v25, %v1962_v3 }
  0x9f   :  { %v103_v58 = vpop.permute.xlu1 %102  ;;  %v101_v59 = vpop.permute.xlu0 %100 }
  0xa0   :  { %v113_v42 = vadd.f32 %v103_v58, %v87_v32  ;;  %v112_v43 = vadd.f32 %v101_v59, %v86_v31 }
  0xa1   :  { %1112 = vrot.lane.b32.xlu1 %v1105_v50, %s1915_s4  ;;  %1114 = vrot.lane.b32.xlu0 %v1107_v51, %s1915_s4  ;;  %v245_v50 = vrot.slane %v232_v33, 2  ;;  %v247_v51 = vrot.slane %v233_v34, 2  ;;  %v1165_v34 = vstv %s2238_s26  ;;  %s2493_s26 = sld [smem:[#allocation6 + $0x5]] }
  0xa2   :  { %v145_v38 = vadd.f32 %v133_v45, %v112_v43  ;;  %v1168_v43 = vmul.f32 %v1165_v34, %v1978_v10  ;;  %v1171_v57 = vmul.f32 %v1165_v34, %v1990_v17 }
  0xa3   :  { %v107_v5 = vpop.permute.xlu1 %106  ;;  %v105_v6 = vpop.permute.xlu0 %104  ;;  %v248_v16 = vsel %vm243_vm1, %v245_v50, %v247_v51 }
  0xa4   :  { %v115_v58 = vadd.f32 %v107_v5, %v89_v49  ;;  %v114_v59 = vadd.f32 %v105_v6, %v88_v47  ;;  %v250_v5 = vrot.slane %v235_v46, 2 }
  0xa5   :  { %1148 = vrot.lane.b32.xlu1 %v1140_v60, %s1916_s10  ;;  %1150 = vrot.lane.b32.xlu0 %v1142_v61, %s1916_s10  ;;  %v146_v60 = vadd.f32 %v135_v44, %v113_v42  ;;  %v244_v61 = vrot.slane %v231_v39, 2  ;;  %v1167_v42 = vmul.f32 %v1165_v34, %v1967_v4 }
  0xa6   :  { %v148_v6 = vadd.f32 %v140_v52, %v115_v58  ;;  %v251_v31 = vsel %vm243_vm1, %v249_v18, %v250_v5 }
  0xa7   :  { %v176_v12 = vpop.permute.xlu1 %175  ;;  %v174_v13 = vpop.permute.xlu0 %173 }
  0xa8   :  { %v186_v48 = vadd.f32 %v176_v12, %v146_v60  ;;  %v185_v62 = vadd.f32 %v174_v13, %v145_v38  ;;  %v246_v12 = vsel %vm243_vm1, %v244_v61, %v245_v50  ;;  %v252_v13 = vrot.slane %v236_v56, 2 }
  0xa9   :  { %1152 = vrot.lane.b32.xlu1 %v1145_v8, %s1916_s10  ;;  %1154 = vrot.lane.b32.xlu0 %v1147_v9, %s1916_s10  ;;  %v147_v9 = vadd.f32 %v138_v53, %v114_v59  ;;  %v1169_v50 = vmul.f32 %v1165_v34, %v1952_v0  ;;  %v1170_v53 = vmul.f32 %v1165_v34, %v1962_v3  ;;  %v1181_v56 = vrot.slane %v1168_v43, 3 }
  0xaa   :  { %v253_v30 = vsel %vm243_vm1, %v250_v5, %v252_v13 }
  0xab   :  { %v180_v22 = vpop.permute.xlu1 %179  ;;  %v178_v24 = vpop.permute.xlu0 %177  ;;  %v1183_v61 = vrot.slane %v1169_v50, 3  ;;  %v1184_v63 = vrot.slane %v1170_v53, 3 }
  0xac   :  { %v188_v19 = vadd.f32 %v180_v22, %v148_v6  ;;  %v187_v20 = vadd.f32 %v178_v24, %v147_v9  ;;  %v1166_v24 = vmul.f32 %v1165_v34, %v1957_v1 }
  0xad   :  { %v1185_v6 = vsel %vm1065_vm2, %v1183_v61, %v1184_v63 }
  0xaf   :  { %v216_v40 = vpop.permute.xlu1 %215  ;;  %v214_v41 = vpop.permute.xlu0 %213 }
  0xb0   :  { %v226_v14 = vadd.f32 %v216_v40, %v186_v48  ;;  %v225_v15 = vadd.f32 %v214_v41, %v185_v62 }
  0xb2   :  { %v259_v28 = vadd.f32 %v248_v16, %v226_v14  ;;  %v258_v29 = vadd.f32 %v246_v12, %v225_v15 }
  0xb3   :  { %v220_v54 = vpop.permute.xlu1 %219  ;;  %v218_v55 = vpop.permute.xlu0 %217 }
  0xb4   :  { %v228_v26 = vadd.f32 %v220_v54, %v188_v19  ;;  %v227_v27 = vadd.f32 %v218_v55, %v187_v20  ;;  %v1178_v54 = vrot.slane %v1166_v24, 3  ;;  %v1179_v55 = vrot.slane %v1167_v42, 3 }
  0xb5   :  { %v660_v42 = vstv %s659_s28  ;;  %s2499_s28 = sld [smem:[#allocation6 + $0x7]] }
  0xb6   :  { %v261_v37 = vadd.f32 %v253_v30, %v228_v26  ;;  %v260_v40 = vadd.f32 %v251_v31, %v227_v27  ;;  %v1180_v48 = vsel %vm1065_vm2, %v1178_v54, %v1179_v55  ;;  %v1182_v62 = vsel %vm1065_vm2, %v1179_v55, %v1181_v56 }
  0xb7   :  { %v289_v2 = vpop.permute.xlu1 %288  ;;  %v287_v8 = vpop.permute.xlu0 %286  ;;  %v663_v53 = vmul.f32 %v660_v42, %v1952_v0  ;;  %v664_v54 = vmul.f32 %v660_v42, %v1962_v3 }
  0xb8   :  { %v299_v32 = vadd.f32 %v289_v2, %v259_v28  ;;  %v298_v33 = vadd.f32 %v287_v8, %v258_v29  ;;  %v1186_v2 = vrot.slane %v1171_v57, 3 }
  0xba   :  { %v1187_v9 = vsel %vm1065_vm2, %v1184_v63, %v1186_v2 }
  0xbb   :  { %v293_v21 = vpop.permute.xlu1 %292  ;;  %v291_v23 = vpop.permute.xlu0 %290 }
  0xbc   :  { %v301_v44 = vadd.f32 %v293_v21, %v261_v37  ;;  %v300_v45 = vadd.f32 %v291_v23, %v260_v40 }
  0xbf   :  { %v329_v35 = vpop.permute.xlu1 %328  ;;  %v327_v36 = vpop.permute.xlu0 %326 }
  0xc0   :  { %v339_v41 = vadd.f32 %v329_v35, %v299_v32  ;;  %v338_v22 = vadd.f32 %v327_v36, %v298_v33 }
  0xc2   :  { %v343_v39 = vmax.f32 %v339_v41, 0.0  ;;  %v342_v46 = vmax.f32 %v338_v22, 0.0 }
  0xc3   :  { %v333_v47 = vpop.permute.xlu1 %332  ;;  %v331_v49 = vpop.permute.xlu0 %330 }
  0xc4   :  { %v341_v51 = vadd.f32 %v333_v47, %v301_v44  ;;  %v340_v52 = vadd.f32 %v331_v49, %v300_v45  ;;  %352 = vrot.lane.b32.xlu1 %v343_v39, %s1919_s27  ;;  %350 = vrot.lane.b32.xlu0 %v342_v46, %s1919_s27  ;;  %v661_v45 = vmul.f32 %v660_v42, %v1957_v1  ;;  %v748_v46 = vstv %s1820_s29  ;;  %s2503_s29 = sld [smem:[#allocation6 + $0x9]] }
  0xc5   :  { %v662_v39 = vmul.f32 %v660_v42, %v1967_v4  ;;  %v749_v47 = vmul.f32 %v748_v46, %v1957_v1  ;;  %v750_v55 = vmul.f32 %v748_v46, %v1967_v4  ;;  %v751_v56 = vmul.f32 %v748_v46, %v1978_v10 }
  0xc6   :  { %v345_v58 = vmax.f32 %v341_v51, 0.0  ;;  %v344_v59 = vmax.f32 %v340_v52, 0.0  ;;  %v754_v4 = vmul.f32 %v748_v46, %v1990_v17 }
  0xc7   :  { %v680_v60 = vpop.permute.xlu1 %679  ;;  %v682_v38 = vpop.permute.xlu0 %681  ;;  %v761_v57 = vrot.slane %v749_v47, 1  ;;  %v764_v63 = vrot.slane %v751_v56, 1 }
  0xc8   :  { %356 = vrot.lane.b32.xlu1 %v345_v58, %s1919_s27  ;;  %354 = vrot.lane.b32.xlu0 %v344_v59, %s1919_s27  ;;  %v691_v51 = vadd.f32 %v680_v60, %v661_v45  ;;  %v692_v52 = vadd.f32 %v682_v38, %v662_v39  ;;  %v752_v58 = vmul.f32 %v748_v46, %v1952_v0  ;;  %v2322_v60 = vld [vmem:[%s3108_s2 + $0x20] sm:$0xff]  ;;  %v769_v42 = vrot.slane %v754_v4, 1 }
  0xc9   :  { %v753_v3 = vmul.f32 %v2322_v60, %v748_v46  ;;  %v900_v45 = vstv %s1824_s30  ;;  %s2511_s30 = sld [smem:[#allocation6 + $0xa]] }
  0xca   :  { %v766_v0 = vrot.slane %v752_v58, 1 }
  0xcb   :  { %v684_v8 = vpop.permute.xlu1 %683  ;;  %v686_v5 = vpop.permute.xlu0 %685 }
  0xcc   :  { %1188 = vrot.lane.b32.xlu1 %v1180_v48, %s1917_s19  ;;  %1190 = vrot.lane.b32.xlu0 %v1182_v62, %s1917_s19  ;;  %v693_v59 = vadd.f32 %v684_v8, %v663_v53  ;;  %v694_v1 = vadd.f32 %v686_v5, %v664_v54  ;;  %v762_v62 = vrot.slane %v750_v55, 1  ;;  %v1859_v53 = vld [vmem:[%s3108_s2 + $0x8] sm:$0xff] }
  0xcd   :  { %v902_v54 = vmul.f32 %v1859_v53, %v900_v45 }
  0xcf   :  { %v706_v14 = vpop.permute.xlu1 %705  ;;  %v708_v15 = vpop.permute.xlu0 %707 }
  0xd0   :  { %1192 = vrot.lane.b32.xlu1 %v1185_v6, %s1917_s19  ;;  %1194 = vrot.lane.b32.xlu0 %v1187_v9, %s1917_s19  ;;  %v717_v61 = vadd.f32 %v706_v14, %v691_v51  ;;  %v718_v48 = vadd.f32 %v708_v15, %v692_v52  ;;  %v763_v9 = vsel %vm130_vm0, %v761_v57, %v762_v62  ;;  %v767_v15 = vrot.slane %v753_v3, 1  ;;  %v1858_v51 = vld [vmem:[%s3108_s2] sm:$0xff] }
  0xd1   :  { %v765_v14 = vsel %vm130_vm0, %v762_v62, %v764_v63  ;;  %v901_v52 = vmul.f32 %v1858_v51, %v900_v45  ;;  %v914_v63 = vrot.slane %v902_v54, 2  ;;  %v905_v3 = vmul.f32 %v2322_v60, %v900_v45 }
  0xd3   :  { %v710_v16 = vpop.permute.xlu1 %709  ;;  %v712_v12 = vpop.permute.xlu0 %711  ;;  %v913_v62 = vrot.slane %v901_v52, 2 }
  0xd4   :  { %v719_v2 = vadd.f32 %v710_v16, %v693_v59  ;;  %v720_v8 = vadd.f32 %v712_v12, %v694_v1  ;;  %v1861_v59 = vld [vmem:[%s3108_s2 + $0x18] sm:$0xff] }
  0xd5   :  { %v904_v1 = vmul.f32 %v1861_v59, %v900_v45 }
  0xd7   :  { %v732_v13 = vpop.permute.xlu1 %731  ;;  %v734_v18 = vpop.permute.xlu0 %733 }
  0xd8   :  { %v743_v5 = vadd.f32 %v732_v13, %v717_v61  ;;  %v744_v6 = vadd.f32 %v734_v18, %v718_v48  ;;  %v768_v13 = vsel %vm130_vm0, %v766_v0, %v767_v15  ;;  %v770_v18 = vsel %vm130_vm0, %v767_v15, %v769_v42 }
  0xd9   :  { %v1052_v0 = vstv %s1828_s7  ;;  %v915_v42 = vsel %vm243_vm1, %v913_v62, %v914_v63  ;;  %s2545_s7 = sld [smem:[#allocation6 + $0xe]] }
  0xda   :  { %v775_v16 = vadd.f32 %v763_v9, %v743_v5  ;;  %v776_v12 = vadd.f32 %v765_v14, %v744_v6  ;;  %v918_v9 = vrot.slane %v904_v1, 2 }
  0xdb   :  { %v2263_v19 = vpop.permute.xlu1 %735  ;;  %v2265_v20 = vpop.permute.xlu0 %737 }
  0xdc   :  { %v745_v46 = vadd.f32 %v2263_v19, %v719_v2  ;;  %v746_v47 = vadd.f32 %v2265_v20, %v720_v8  ;;  %v1860_v19 = vld [vmem:[%s3108_s2 + $0x10] sm:$0x7] }
  0xdd   :  { %v903_v20 = vmul.f32 %v1860_v19, %v900_v45 }
  0xde   :  { %v777_v57 = vadd.f32 %v768_v13, %v745_v46  ;;  %v778_v58 = vadd.f32 %v770_v18, %v746_v47  ;;  %v919_v46 = vrot.slane %v905_v3, 2 }
  0xdf   :  { %v2267_v21 = vpop.permute.xlu1 %803  ;;  %v2269_v23 = vpop.permute.xlu0 %805  ;;  %v916_v4 = vrot.slane %v903_v20, 2 }
  0xe0   :  { %v815_v55 = vadd.f32 %v2267_v21, %v775_v16  ;;  %v816_v56 = vadd.f32 %v2269_v23, %v776_v12  ;;  %v1862_v21 = vld [vmem:[%s3108_s2 + $0x28] sm:$0x7]  ;;  %v1053_v16 = vmul.f32 %v1858_v51, %v1052_v0  ;;  %v1054_v12 = vmul.f32 %v1859_v53, %v1052_v0  ;;  %s1809_s2 = sld [smem:[#allocation3 + $0x1]] }
  0xe1   :  { %v906_v23 = vmul.f32 %v1862_v21, %v900_v45  ;;  %v917_v47 = vsel %vm243_vm1, %v914_v63, %v916_v4  ;;  %v920_v54 = vsel %vm243_vm1, %v918_v9, %v919_v46 }
  0xe2   :  { %v1067_v51 = vrot.slane %v1054_v12, 3 }
  0xe3   :  { %v2271_v26 = vpop.permute.xlu1 %807  ;;  %v2273_v27 = vpop.permute.xlu0 %809  ;;  %v921_v45 = vrot.slane %v906_v23, 2 }
  0xe4   :  { %v817_v2 = vadd.f32 %v2271_v26, %v777_v57  ;;  %v818_v8 = vadd.f32 %v2273_v27, %v778_v58  ;;  %v1056_v57 = vmul.f32 %v1861_v59, %v1052_v0 }
  0xe5   :  { %v922_v20 = vsel %vm243_vm1, %v919_v46, %v921_v45 }
  0xe7   :  { %v2275_v28 = vpop.permute.xlu1 %843  ;;  %v2277_v29 = vpop.permute.xlu0 %845 }
  0xe8   :  { %v855_v5 = vadd.f32 %v2275_v28, %v815_v55  ;;  %v856_v6 = vadd.f32 %v2277_v29, %v816_v56  ;;  %v1055_v29 = vmul.f32 %v1860_v19, %v1052_v0  ;;  %v1066_v55 = vrot.slane %v1053_v16, 3 }
  0xe9   :  { %v1058_v19 = vmul.f32 %v1862_v21, %v1052_v0  ;;  %v1071_v21 = vrot.slane %v1056_v57, 3  ;;  %v410_v57 = vstv %s1810_s20 }
  0xea   :  { %v1068_v3 = vsel %vm1065_vm2, %v1066_v55, %v1067_v51 }
  0xeb   :  { %v2279_v30 = vpop.permute.xlu1 %847  ;;  %v2281_v31 = vpop.permute.xlu0 %849 }
  0xec   :  { %v857_v27 = vadd.f32 %v2279_v30, %v817_v2  ;;  %v858_v28 = vadd.f32 %v2281_v31, %v818_v8  ;;  %v1069_v30 = vrot.slane %v1055_v29, 3  ;;  %v1057_v31 = vmul.f32 %v2322_v60, %v1052_v0 }
  0xed   :  { %v1074_v0 = vrot.slane %v1058_v19, 3  ;;  %v468_v19 = vstv %s1812_s0 }
  0xee   :  { %v1070_v4 = vsel %vm1065_vm2, %v1067_v51, %v1069_v30  ;;  %v1072_v23 = vrot.slane %v1057_v31, 3 }
  0xef   :  { %v2283_v32 = vpop.permute.xlu1 %883  ;;  %v2285_v33 = vpop.permute.xlu0 %885 }
  0xf0   :  { %v895_v14 = vadd.f32 %v2283_v32, %v855_v5  ;;  %v896_v15 = vadd.f32 %v2285_v33, %v856_v6  ;;  %v1073_v5 = vsel %vm1065_vm2, %v1071_v21, %v1072_v23  ;;  %v1075_v6 = vsel %vm1065_vm2, %v1072_v23, %v1074_v0 }
  0xf2   :  { %v927_v33 = vadd.f32 %v915_v42, %v895_v14  ;;  %v928_v52 = vadd.f32 %v917_v47, %v896_v15 }
  0xf3   :  { %v2287_v34 = vpop.permute.xlu1 %887  ;;  %v2289_v35 = vpop.permute.xlu0 %889 }
  0xf4   :  { %v897_v18 = vadd.f32 %v2287_v34, %v857_v27  ;;  %v898_v32 = vadd.f32 %v2289_v35, %v858_v28 }
  0xf6   :  { %v929_v35 = vadd.f32 %v920_v54, %v897_v18  ;;  %v930_v1 = vadd.f32 %v922_v20, %v898_v32 }
  0xf7   :  { %v2291_v36 = vpop.permute.xlu1 %955  ;;  %v2293_v37 = vpop.permute.xlu0 %957 }
  0xf8   :  { %v967_v53 = vadd.f32 %v2291_v36, %v927_v33  ;;  %v968_v56 = vadd.f32 %v2293_v37, %v928_v52 }
  0xfb   :  { %v2295_v40 = vpop.permute.xlu1 %959  ;;  %v2297_v41 = vpop.permute.xlu0 %961 }
  0xfc   :  { %v969_v36 = vadd.f32 %v2295_v40, %v929_v35  ;;  %v970_v37 = vadd.f32 %v2297_v41, %v930_v1 }
  0xff   :  { %v2299_v22 = vpop.permute.xlu1 %995  ;;  %v2301_v24 = vpop.permute.xlu0 %997 }
 0x100   :  { %v1007_v62 = vadd.f32 %v2299_v22, %v967_v53  ;;  %v1008_v63 = vadd.f32 %v2301_v24, %v968_v56 }
 0x103   :  { %v2303_v43 = vpop.permute.xlu1 %999  ;;  %v2305_v44 = vpop.permute.xlu0 %1001 }
 0x104   :  { %v1009_v24 = vadd.f32 %v2303_v43, %v969_v36  ;;  %v1010_v8 = vadd.f32 %v2305_v44, %v970_v37 }
 0x107   :  { %v2310_v49 = vpop.permute.xlu1 %1035  ;;  %v2312_v50 = vpop.permute.xlu0 %1037 }
 0x108   :  { %v1047_v59 = vadd.f32 %v2310_v49, %v1007_v62  ;;  %v1048_v60 = vadd.f32 %v2312_v50, %v1008_v63 }
 0x10a   :  { %v1080_v49 = vadd.f32 %v1068_v3, %v1047_v59  ;;  %v1081_v50 = vadd.f32 %v1070_v4, %v1048_v60  ;;  %v508_v3 = vstv %s1813_s1 }
 0x10b   :  { %v2326_v10 = vpop.permute.xlu1 %1039  ;;  %v2328_v38 = vpop.permute.xlu0 %1041 }
 0x10c   :  { %v1049_v40 = vadd.f32 %v2326_v10, %v1009_v24  ;;  %v1050_v41 = vadd.f32 %v2328_v38, %v1010_v8 }
 0x10e   :  { %v1082_v15 = vadd.f32 %v1073_v5, %v1049_v40  ;;  %v1083_v10 = vadd.f32 %v1075_v6, %v1050_v41  ;;  %v580_v5 = vstv %s1815_s21 }
 0x10f   :  { %v2332_v39 = vpop.permute.xlu1 %1108  ;;  %v2334_v17 = vpop.permute.xlu0 %1110 }
 0x110   :  { %v1120_v43 = vadd.f32 %v2332_v39, %v1080_v49  ;;  %v1121_v44 = vadd.f32 %v2334_v17, %v1081_v50 }
 0x113   :  { %v2354_v61 = vpop.permute.xlu1 %1112  ;;  %v2356_v48 = vpop.permute.xlu0 %1114 }
 0x114   :  { %v1122_v45 = vadd.f32 %v2354_v61, %v1082_v15  ;;  %v1123_v16 = vadd.f32 %v2356_v48, %v1083_v10  ;;  %v384_v48 = vstv %s1809_s2 }
 0x117   :  { %v1149_v26 = vpop.permute.xlu1 %1148  ;;  %v1151_v13 = vpop.permute.xlu0 %1150 }
 0x118   :  { %v1160_v42 = vadd.f32 %v1149_v26, %v1120_v43  ;;  %v1161_v38 = vadd.f32 %v1151_v13, %v1121_v44 }
 0x11b   :  { %v1153_v34 = vpop.permute.xlu1 %1152  ;;  %v1155_v58 = vpop.permute.xlu0 %1154 }
 0x11c   :  { %v1162_v39 = vadd.f32 %v1153_v34, %v1122_v45  ;;  %v1163_v28 = vadd.f32 %v1155_v58, %v1123_v16 }
 0x136   :  { %v353_v2 = vpop.permute.xlu1 %352  ;;  %v351_v22 = vpop.permute.xlu0 %350 }
 0x137   :  { %364 = vst.msk [vmem:[#allocation2 + $0x9] sm:$0xff] %vm362_vm5, %v353_v2  ;;  %363 = vst.msk [vmem:[#allocation2 + $0x1] sm:$0xff] %vm362_vm5, %v351_v22 }
 0x13a   :  { %v357_v9 = vpop.permute.xlu1 %356  ;;  %v355_v14 = vpop.permute.xlu0 %354 }
 0x13b   :  { %366 = vst.msk [vmem:[#allocation2 + $0x21] sm:$0xff] %vm362_vm5, %v357_v9  ;;  %365 = vst.msk [vmem:[#allocation2 + $0x19] sm:$0xff] %vm362_vm5, %v355_v14 }
 0x13e   :  { %v1189_v46 = vpop.permute.xlu1 %1188  ;;  %v1191_v47 = vpop.permute.xlu0 %1190  ;;  %v2403_v61 = vld [vmem:[#allocation2 + $0x8] sm:$0xff]  ;;  %v2405_v54 = vld [vmem:[#allocation2] sm:$0xff]  ;;  %v2419_v31 = vld [vmem:[#allocation2 + $0x10] sm:$0x7] }
 0x13f   :  { %v1200_v12 = vadd.f32 %v1189_v46, %v1160_v42  ;;  %v1201_v27 = vadd.f32 %v1191_v47, %v1161_v38  ;;  %v386_v20 = vmul.f32 %v384_v48, %v2403_v61  ;;  %v385_v55 = vmul.f32 %v384_v48, %v2405_v54 }
 0x140   :  { %v412_v34 = vmul.f32 %v410_v57, %v2403_v61  ;;  %v411_v58 = vmul.f32 %v410_v57, %v2405_v54  ;;  %v470_v35 = vmul.f32 %v468_v19, %v2403_v61  ;;  %v471_v1 = vmul.f32 %v468_v19, %v2419_v31 }
 0x141   :  { %v1204_v17 = vmax.f32 %v1200_v12, 0.0  ;;  %v1205_v29 = vmax.f32 %v1201_v27, 0.0  ;;  %v469_v62 = vmul.f32 %v468_v19, %v2405_v54  ;;  %v510_v22 = vmul.f32 %v508_v3, %v2403_v61 }
 0x142   :  { %v1193_v18 = vpop.permute.xlu1 %1192  ;;  %v1195_v32 = vpop.permute.xlu0 %1194  ;;  %v2411_v51 = vld [vmem:[#allocation2 + $0x20] sm:$0xff]  ;;  %v2413_v53 = vld [vmem:[#allocation2 + $0x18] sm:$0xff]  ;;  %v2430_v63 = vld [vmem:[#allocation2 + $0x28] sm:$0x7]  ;;  %v482_v59 = vrot.slane %v470_v35, 1  ;;  %v484_v60 = vrot.slane %v471_v1, 1  ;;  %v511_v24 = vmul.f32 %v508_v3, %v2419_v31  ;;  %v509_v8 = vmul.f32 %v508_v3, %v2405_v54 }
 0x143   :  { %v1202_v33 = vadd.f32 %v1193_v18, %v1162_v39  ;;  %v1203_v52 = vadd.f32 %v1195_v32, %v1163_v28  ;;  %1212 = vrot.lane.b32.xlu1 %v1204_v17, %s1919_s27  ;;  %1214 = vrot.lane.b32.xlu0 %v1205_v29, %s1919_s27  ;;  %v388_v56 = vmul.f32 %v384_v48, %v2411_v51  ;;  %v481_v4 = vrot.slane %v469_v62, 1 }
 0x144   :  { %v387_v30 = vmul.f32 %v384_v48, %v2413_v53  ;;  %v414_v36 = vmul.f32 %v410_v57, %v2411_v51  ;;  %v413_v37 = vmul.f32 %v410_v57, %v2413_v53  ;;  %v473_v21 = vmul.f32 %v468_v19, %v2411_v51 }
 0x145   :  { %v1206_v26 = vmax.f32 %v1202_v33, 0.0  ;;  %v1207_v13 = vmax.f32 %v1203_v52, 0.0  ;;  %v474_v23 = vmul.f32 %v468_v19, %v2430_v63  ;;  %v472_v0 = vmul.f32 %v468_v19, %v2413_v53 }
 0x146   :  { %v485_v2 = vsel %vm130_vm0, %v482_v59, %v484_v60  ;;  %v483_v40 = vsel %vm130_vm0, %v481_v4, %v482_v59  ;;  %v487_v41 = vrot.slane %v473_v21, 1  ;;  %v522_v6 = vrot.slane %v510_v22, 1 }
 0x147   :  { %1216 = vrot.lane.b32.xlu1 %v1206_v26, %s1919_s27  ;;  %1218 = vrot.lane.b32.xlu0 %v1207_v13, %s1919_s27  ;;  %v489_v49 = vrot.slane %v474_v23, 1  ;;  %v486_v50 = vrot.slane %v472_v0, 1  ;;  %v524_v9 = vrot.slane %v511_v24, 1  ;;  %v513_v14 = vmul.f32 %v508_v3, %v2411_v51  ;;  %s2495_s27 = sld [smem:[#allocation6 + $0x6]] }
 0x148   :  { %v514_v43 = vmul.f32 %v508_v3, %v2430_v63  ;;  %v521_v10 = vrot.slane %v509_v8, 1  ;;  %v512_v42 = vmul.f32 %v508_v3, %v2413_v53  ;;  %v582_v45 = vmul.f32 %v580_v5, %v2403_v61 }
 0x149   :  { %v490_v44 = vsel %vm130_vm0, %v487_v41, %v489_v49  ;;  %v488_v15 = vsel %vm130_vm0, %v486_v50, %v487_v41  ;;  %v525_v38 = vsel %vm130_vm0, %v522_v6, %v524_v9  ;;  %v527_v46 = vrot.slane %v513_v14, 1 }
 0x14a   :  { %v529_v47 = vrot.slane %v514_v43, 1  ;;  %v523_v16 = vsel %vm130_vm0, %v521_v10, %v522_v6  ;;  %v526_v12 = vrot.slane %v512_v42, 1  ;;  %v583_v27 = vmul.f32 %v580_v5, %v2419_v31 }
 0x14b   :  { %395 = vrot.lane.b32.xlu1 %v386_v20, %s1915_s4  ;;  %393 = vrot.lane.b32.xlu0 %v385_v55, %s1915_s4  ;;  %v581_v39 = vmul.f32 %v580_v5, %v2405_v54  ;;  %v620_v28 = vstv %s1816_s22  ;;  %v594_v29 = vrot.slane %v582_v45, 2  ;;  %v585_v18 = vmul.f32 %v580_v5, %v2411_v51 }
 0x14c   :  { %v530_v17 = vsel %vm130_vm0, %v527_v46, %v529_v47  ;;  %v586_v32 = vmul.f32 %v580_v5, %v2430_v63  ;;  %v528_v33 = vsel %vm130_vm0, %v526_v12, %v527_v46  ;;  %v596_v52 = vrot.slane %v583_v27, 2 }
 0x14d   :  { %v593_v26 = vrot.slane %v581_v39, 2  ;;  %v584_v13 = vmul.f32 %v580_v5, %v2413_v53  ;;  %v599_v48 = vrot.slane %v585_v18, 2  ;;  %v622_v55 = vmul.f32 %v620_v28, %v2403_v61 }
 0x14e   :  { %v601_v20 = vrot.slane %v586_v32, 2  ;;  %v625_v62 = vmul.f32 %v620_v28, %v2411_v51  ;;  %v624_v59 = vmul.f32 %v620_v28, %v2413_v53  ;;  %v439_v41 = vmul.f32 %v2419_v31, %v2189_v7 }
 0x14f   :  { %399 = vrot.lane.b32.xlu1 %v388_v56, %s1915_s4  ;;  %397 = vrot.lane.b32.xlu0 %v387_v30, %s1915_s4  ;;  %v623_v56 = vmul.f32 %v620_v28, %v2419_v31  ;;  %v597_v30 = vsel %vm243_vm1, %v594_v29, %v596_v52  ;;  %v595_v57 = vsel %vm243_vm1, %v593_v26, %v594_v29  ;;  %v598_v19 = vrot.slane %v584_v13, 2 }
 0x150   :  { %v634_v35 = vrot.slane %v622_v55, 2  ;;  %v639_v21 = vrot.slane %v625_v62, 2  ;;  %v638_v0 = vrot.slane %v624_v59, 2  ;;  %v437_v49 = vmul.f32 %v2405_v54, %v2189_v7 }
 0x151   :  { %v636_v1 = vrot.slane %v623_v56, 2  ;;  %v600_v3 = vsel %vm243_vm1, %v598_v19, %v599_v48  ;;  %v441_v50 = vmul.f32 %v2411_v51, %v2189_v7  ;;  %v2515_v9 = vmul.f32 %v2403_v61, %v2193_v11 }
 0x152   :  { %v640_v22 = vsel %vm243_vm1, %v638_v0, %v639_v21  ;;  %v2519_v14 = vmul.f32 %v2405_v54, %v2193_v11  ;;  %v442_v43 = vmul.f32 %v2430_v63, %v2189_v7  ;;  %v2531_v10 = vmul.f32 %v2411_v51, %v2193_v11 }
 0x153   :  { %421 = vrot.lane.b32.xlu1 %v412_v34, %s1916_s10  ;;  %419 = vrot.lane.b32.xlu0 %v411_v58, %s1916_s10  ;;  %v621_v34 = vmul.f32 %v620_v28, %v2405_v54  ;;  %v602_v58 = vsel %vm243_vm1, %v599_v48, %v601_v20  ;;  %v637_v60 = vsel %vm243_vm1, %v634_v35, %v636_v1  ;;  %v455_v12 = vrot.slane %v441_v50, 1 }
 0x154   :  { %v550_v42 = vmul.f32 %v2403_v61, %v2213_v25  ;;  %v549_v46 = vmul.f32 %v2405_v54, %v2213_v25  ;;  %v553_v47 = vmul.f32 %v2411_v51, %v2213_v25  ;;  %v554_v45 = vmul.f32 %v2430_v63, %v2213_v25 }
 0x155   :  { %v2565_v52 = vstv %s2491_s25  ;;  %v2576_v20 = vstv %s2493_s26  ;;  %v2594_v1 = vstv %s2499_s28  ;;  %v2636_v50 = vstv %s2549_s8 }
 0x156   :  { %v562_v32 = vrot.slane %v550_v42, 2  ;;  %v561_v26 = vrot.slane %v549_v46, 2  ;;  %v567_v13 = vrot.slane %v553_v47, 2 }
 0x157   :  { %425 = vrot.lane.b32.xlu1 %v414_v36, %s1916_s10  ;;  %423 = vrot.lane.b32.xlu0 %v413_v37, %s1916_s10  ;;  %v633_v36 = vrot.slane %v621_v34, 2  ;;  %v626_v37 = vmul.f32 %v620_v28, %v2430_v63  ;;  %v377_v63 = vmul.f32 %v2413_v53, %v2193_v11  ;;  %v2558_v28 = vstv %s2489_s24 }
 0x158   :  { %v569_v11 = vrot.slane %v554_v45, 2  ;;  %v2605_v59 = vsel %vm243_vm1, %v561_v26, %v562_v32  ;;  %v2661_v45 = vstv %s2578_s11 }
 0x159   :  { %v635_v4 = vsel %vm243_vm1, %v633_v36, %v634_v35  ;;  %v641_v23 = vrot.slane %v626_v37, 2  ;;  %v2591_v35 = vstv %s2495_s27  ;;  %v2602_v37 = vstv %s2503_s29 }
 0x15b   :  { %493 = vrot.lane.b32.xlu1 %v485_v2, %s1915_s4  ;;  %491 = vrot.lane.b32.xlu0 %v483_v40, %s1915_s4  ;;  %v642_v2 = vsel %vm243_vm1, %v639_v21, %v641_v23  ;;  %v438_v40 = vmul.f32 %v2403_v61, %v2189_v7  ;;  %v449_v61 = vrot.slane %v437_v49, 1  ;;  %v2614_v21 = vstv %s2525_s5 }
 0x15c   :  { %v2633_v49 = vstv %s2545_s7 }
 0x15f   :  { %497 = vrot.lane.b32.xlu1 %v490_v44, %s1915_s4  ;;  %495 = vrot.lane.b32.xlu0 %v488_v15, %s1915_s4  ;;  %v440_v44 = vmul.f32 %v2413_v53, %v2189_v7  ;;  %v1245_v15 = vstv %s1832_s23  ;;  %v450_v7 = vrot.slane %v438_v40, 1 }
 0x161   :  { %v454_v29 = vrot.slane %v440_v44, 1  ;;  %v2573_v48 = vsel %vm130_vm0, %v449_v61, %v450_v7 }
 0x163   :  { %533 = vrot.lane.b32.xlu1 %v525_v38, %s1916_s10  ;;  %531 = vrot.lane.b32.xlu0 %v523_v16, %s1916_s10  ;;  %v551_v38 = vmul.f32 %v2419_v31, %v2213_v25  ;;  %v452_v16 = vrot.slane %v439_v41, 1  ;;  %v552_v31 = vmul.f32 %v2413_v53, %v2213_v25 }
 0x165   :  { %v2570_v53 = vsel %vm130_vm0, %v450_v7, %v452_v16  ;;  %v566_v55 = vrot.slane %v552_v31, 2 }
 0x167   :  { %537 = vrot.lane.b32.xlu1 %v530_v17, %s1916_s10  ;;  %535 = vrot.lane.b32.xlu0 %v528_v33, %s1916_s10  ;;  %v457_v17 = vrot.slane %v442_v43, 1  ;;  %v564_v33 = vrot.slane %v551_v38, 2 }
 0x169   :  { %v2585_v34 = vsel %vm130_vm0, %v455_v12, %v457_v17  ;;  %v2599_v36 = vsel %vm243_vm1, %v562_v32, %v564_v33 }
 0x16b   :  { %605 = vrot.lane.b32.xlu1 %v597_v30, %s1915_s4  ;;  %603 = vrot.lane.b32.xlu0 %v595_v57, %s1915_s4 }
 0x16f   :  { %609 = vrot.lane.b32.xlu1 %v602_v58, %s1915_s4  ;;  %607 = vrot.lane.b32.xlu0 %v600_v3, %s1915_s4  ;;  %v2588_v58 = vsel %vm130_vm0, %v454_v29, %v455_v12 }
 0x173   :  { %645 = vrot.lane.b32.xlu1 %v637_v60, %s1916_s10  ;;  %643 = vrot.lane.b32.xlu0 %v635_v4, %s1916_s10  ;;  %v2608_v60 = vsel %vm243_vm1, %v567_v13, %v569_v11  ;;  %v2611_v4 = vstv %s2511_s30 }
 0x177   :  { %649 = vrot.lane.b32.xlu1 %v642_v2, %s1916_s10  ;;  %647 = vrot.lane.b32.xlu0 %v640_v22, %s1916_s10  ;;  %v2623_v22 = vsel %vm243_vm1, %v566_v55, %v567_v13  ;;  %v2690_v55 = vstv %s2628_s12 }
 0x1b5   :  { %v1213_v24 = vpop.permute.xlu1 %1212  ;;  %v1215_v8 = vpop.permute.xlu0 %1214 }
 0x1b6   :  { %1224 = vst.msk [vmem:[#allocation2 + $0x1] sm:$0xff] %vm362_vm5, %v1213_v24  ;;  %1225 = vst.msk [vmem:[#allocation2 + $0x9] sm:$0xff] %vm362_vm5, %v1215_v8  ;;  %v2626_v24 = vstv %s2537_s6 }
 0x1b9   :  { %v1217_v5 = vpop.permute.xlu1 %1216  ;;  %v1219_v6 = vpop.permute.xlu0 %1218 }
 0x1ba   :  { %1226 = vst.msk [vmem:[#allocation2 + $0x19] sm:$0xff] %vm362_vm5, %v1217_v5  ;;  %1227 = vst.msk [vmem:[#allocation2 + $0x21] sm:$0xff] %vm362_vm5, %v1219_v6  ;;  %v2639_v5 = vstv %s2560_s9 }
 0x1bd   :  { %v2551_v27 = vld [vmem:[#allocation2] sm:$0xff]  ;;  %v2553_v54 = vld [vmem:[#allocation2 + $0x8] sm:$0xff]  ;;  %v396_v39 = vpop.permute.xlu1 %395  ;;  %v394_v51 = vpop.permute.xlu0 %393  ;;  %v2616_v23 = vld [vmem:[#allocation2 + $0x10] sm:$0x7] }
 0x1be   :  { %v1247_v25 = vmul.f32 %v1245_v15, %v2553_v54  ;;  %v1246_v18 = vmul.f32 %v1245_v15, %v2551_v27  ;;  %v406_v0 = vadd.f32 %v396_v39, %v2515_v9  ;;  %v405_v2 = vadd.f32 %v394_v51, %v2519_v14 }
 0x1bf   :  { %v1273_v41 = vmul.f32 %v2558_v28, %v2553_v54  ;;  %v1272_v14 = vmul.f32 %v2558_v28, %v2551_v27  ;;  %v1299_v43 = vmul.f32 %v2565_v52, %v2553_v54  ;;  %v1298_v44 = vmul.f32 %v2565_v52, %v2551_v27 }
 0x1c0   :  { %1256 = vrot.lane.b32.xlu1 %v1247_v25, %s1915_s4  ;;  %1254 = vrot.lane.b32.xlu0 %v1246_v18, %s1915_s4  ;;  %v1358_v42 = vmul.f32 %v2576_v20, %v2616_v23  ;;  %v1356_v38 = vmul.f32 %v2576_v20, %v2551_v27  ;;  %v2658_v47 = vmul.f32 %v2591_v35, %v2553_v54 }
 0x1c1   :  { %v2580_v56 = vld [vmem:[#allocation2 + $0x18] sm:$0xff]  ;;  %v2582_v30 = vld [vmem:[#allocation2 + $0x20] sm:$0xff]  ;;  %v400_v57 = vpop.permute.xlu1 %399  ;;  %v398_v19 = vpop.permute.xlu0 %397  ;;  %v1398_v31 = vmul.f32 %v2591_v35, %v2616_v23  ;;  %v2673_v39 = vmul.f32 %v2594_v1, %v2553_v54  ;;  %v2675_v51 = vld [vmem:[#allocation2 + $0x28] sm:$0x7] }
 0x1c2   :  { %v1249_v62 = vmul.f32 %v1245_v15, %v2582_v30  ;;  %v1248_v3 = vmul.f32 %v1245_v15, %v2580_v56  ;;  %v1357_v15 = vmul.f32 %v2576_v20, %v2553_v54  ;;  %v408_v7 = vadd.f32 %v400_v57, %v2531_v10 }
 0x1c3   :  { %v407_v46 = vadd.f32 %v398_v19, %v377_v63  ;;  %v1275_v12 = vmul.f32 %v2558_v28, %v2582_v30  ;;  %v2669_v10 = vmul.f32 %v2591_v35, %v2551_v27  ;;  %v1274_v29 = vmul.f32 %v2558_v28, %v2580_v56 }
 0x1c4   :  { %1260 = vrot.lane.b32.xlu1 %v1249_v62, %s1915_s4  ;;  %1258 = vrot.lane.b32.xlu0 %v1248_v3, %s1915_s4  ;;  %v1301_v25 = vmul.f32 %v2565_v52, %v2582_v30  ;;  %v1300_v18 = vmul.f32 %v2565_v52, %v2580_v56  ;;  %v1369_v32 = vrot.slane %v1357_v15, 1  ;;  %v1371_v33 = vrot.slane %v1358_v42, 1 }
 0x1c5   :  { %v422_v8 = vpop.permute.xlu1 %421  ;;  %v420_v40 = vpop.permute.xlu0 %419  ;;  %v1368_v26 = vrot.slane %v1356_v38, 1  ;;  %v1360_v28 = vmul.f32 %v2576_v20, %v2582_v30  ;;  %v1361_v52 = vmul.f32 %v2576_v20, %v2675_v51  ;;  %v1359_v62 = vmul.f32 %v2576_v20, %v2580_v56 }
 0x1c6   :  { %v432_v6 = vadd.f32 %v422_v8, %v406_v0  ;;  %v431_v9 = vadd.f32 %v420_v40, %v405_v2  ;;  %v1409_v3 = vrot.slane %v2658_v47, 1  ;;  %v1401_v2 = vmul.f32 %v2591_v35, %v2675_v51 }
 0x1c7   :  { %v1399_v8 = vmul.f32 %v2591_v35, %v2580_v56  ;;  %v1372_v40 = vsel %vm130_vm0, %v1369_v32, %v1371_v33  ;;  %v1438_v20 = vmul.f32 %v2594_v1, %v2616_v23  ;;  %v1374_v15 = vrot.slane %v1360_v28, 1 }
 0x1c8   :  { %1282 = vrot.lane.b32.xlu1 %v1273_v41, %s1916_s10  ;;  %1280 = vrot.lane.b32.xlu0 %v1272_v14, %s1916_s10  ;;  %v464_v13 = vadd.f32 %v2570_v53, %v432_v6  ;;  %v463_v11 = vadd.f32 %v2573_v48, %v431_v9  ;;  %v1400_v53 = vmul.f32 %v2591_v35, %v2582_v30  ;;  %v1411_v6 = vrot.slane %v1398_v31, 1 }
 0x1c9   :  { %v426_v16 = vpop.permute.xlu1 %425  ;;  %v424_v61 = vpop.permute.xlu0 %423  ;;  %v1370_v41 = vsel %vm130_vm0, %v1368_v26, %v1369_v32  ;;  %v1436_v35 = vmul.f32 %v2594_v1, %v2551_v27  ;;  %v1408_v47 = vrot.slane %v2669_v10, 1  ;;  %v1413_v31 = vrot.slane %v1399_v8, 1 }
 0x1ca   :  { %v434_v63 = vadd.f32 %v426_v16, %v408_v7  ;;  %v433_v17 = vadd.f32 %v424_v61, %v407_v46  ;;  %v1376_v7 = vrot.slane %v1361_v52, 1  ;;  %v1373_v46 = vrot.slane %v1359_v62, 1 }
 0x1cb   :  { %v1414_v16 = vrot.slane %v1400_v53, 1  ;;  %v1449_v10 = vrot.slane %v2673_v39, 1  ;;  %v1509_v32 = vmul.f32 %v2602_v37, %v2553_v54  ;;  %v1410_v28 = vsel %vm130_vm0, %v1408_v47, %v1409_v3 }
 0x1cc   :  { %1286 = vrot.lane.b32.xlu1 %v1275_v12, %s1916_s10  ;;  %1284 = vrot.lane.b32.xlu0 %v1274_v29, %s1916_s10  ;;  %v466_v9 = vadd.f32 %v2585_v34, %v434_v63  ;;  %v465_v14 = vadd.f32 %v2588_v58, %v433_v17  ;;  %v1440_v34 = vmul.f32 %v2594_v1, %v2582_v30  ;;  %v1451_v17 = vrot.slane %v1438_v20, 1 }
 0x1cd   :  { %v494_v57 = vpop.permute.xlu1 %493  ;;  %v492_v19 = vpop.permute.xlu0 %491  ;;  %v1441_v58 = vmul.f32 %v2594_v1, %v2675_v51  ;;  %v1439_v63 = vmul.f32 %v2594_v1, %v2580_v56  ;;  %v1448_v29 = vrot.slane %v1436_v35, 1  ;;  %v1510_v1 = vmul.f32 %v2602_v37, %v2616_v23 }
 0x1ce   :  { %v504_v0 = vadd.f32 %v494_v57, %v464_v13  ;;  %v503_v48 = vadd.f32 %v492_v19, %v463_v11  ;;  %v1377_v13 = vsel %vm130_vm0, %v1374_v15, %v1376_v7  ;;  %v1375_v11 = vsel %vm130_vm0, %v1373_v46, %v1374_v15 }
 0x1cf   :  { %v2737_v57 = vsel %vm130_vm0, %v1413_v31, %v1414_v16  ;;  %v1454_v19 = vrot.slane %v1440_v34, 1  ;;  %v1456_v52 = vrot.slane %v1441_v58, 1  ;;  %v1453_v62 = vrot.slane %v1439_v63, 1 }
 0x1d0   :  { %1308 = vrot.lane.b32.xlu1 %v1299_v43, %s1917_s19  ;;  %1306 = vrot.lane.b32.xlu0 %v1298_v44, %s1917_s19  ;;  %v1416_v43 = vrot.slane %v1401_v2, 1  ;;  %v2715_v44 = vsel %vm130_vm0, %v1409_v3, %v1411_v6  ;;  %v1508_v53 = vmul.f32 %v2602_v37, %v2551_v27  ;;  %v2744_v3 = vsel %vm130_vm0, %v1449_v10, %v1451_v17 }
 0x1d1   :  { %v498_v42 = vpop.permute.xlu1 %497  ;;  %v496_v38 = vpop.permute.xlu0 %495  ;;  %v1512_v2 = vmul.f32 %v2602_v37, %v2582_v30  ;;  %v1523_v20 = vrot.slane %v1510_v1, 2  ;;  %v1550_v35 = vmul.f32 %v2611_v4, %v2616_v23  ;;  %v2765_v7 = vsel %vm130_vm0, %v1453_v62, %v1454_v19 }
 0x1d2   :  { %v506_v61 = vadd.f32 %v498_v42, %v466_v9  ;;  %v505_v12 = vadd.f32 %v496_v38, %v465_v14  ;;  %v2734_v39 = vsel %vm130_vm0, %v1414_v16, %v1416_v43  ;;  %v1513_v9 = vmul.f32 %v2602_v37, %v2675_v51 }
 0x1d3   :  { %v1548_v42 = vmul.f32 %v2611_v4, %v2551_v27  ;;  %v2762_v38 = vsel %vm130_vm0, %v1454_v19, %v1456_v52  ;;  %v1520_v46 = vrot.slane %v1508_v53, 2 }
 0x1d4   :  { %1312 = vrot.lane.b32.xlu1 %v1301_v25, %s1917_s19  ;;  %1310 = vrot.lane.b32.xlu0 %v1300_v18, %s1917_s19  ;;  %v1528_v58 = vrot.slane %v1513_v9, 2 }
 0x1d5   :  { %v534_v33 = vpop.permute.xlu1 %533  ;;  %v532_v26 = vpop.permute.xlu0 %531 }
 0x1d6   :  { %v544_v25 = vadd.f32 %v534_v33, %v504_v0  ;;  %v543_v18 = vadd.f32 %v532_v26, %v503_v48  ;;  %v2747_v0 = vsel %vm130_vm0, %v1448_v29, %v1449_v10  ;;  %v1521_v48 = vrot.slane %v1509_v32, 2 }
 0x1d7   :  { %v1563_v32 = vrot.slane %v1550_v35, 2 }
 0x1d8   :  { %1380 = vrot.lane.b32.xlu1 %v1372_v40, %s1915_s4  ;;  %1378 = vrot.lane.b32.xlu0 %v1370_v41, %s1915_s4  ;;  %v1511_v40 = vmul.f32 %v2602_v37, %v2580_v56  ;;  %v1549_v41 = vmul.f32 %v2611_v4, %v2553_v54  ;;  %v2769_v37 = vmul.f32 %v2611_v4, %v2582_v30 }
 0x1d9   :  { %v538_v8 = vpop.permute.xlu1 %537  ;;  %v536_v6 = vpop.permute.xlu0 %535  ;;  %v576_v47 = vadd.f32 %v2599_v36, %v544_v25  ;;  %v575_v16 = vadd.f32 %v2605_v59, %v543_v18  ;;  %v2780_v34 = vsel %vm243_vm1, %v1521_v48, %v1523_v20  ;;  %v1560_v36 = vrot.slane %v1548_v42, 2 }
 0x1da   :  { %v546_v14 = vadd.f32 %v538_v8, %v506_v61  ;;  %v545_v15 = vadd.f32 %v536_v6, %v505_v12  ;;  %v1526_v61 = vrot.slane %v1512_v2, 2  ;;  %v1553_v12 = vmul.f32 %v2611_v4, %v2675_v51 }
 0x1db   :  { %v1525_v63 = vrot.slane %v1511_v40, 2  ;;  %v1561_v10 = vrot.slane %v1549_v41, 2  ;;  %v2784_v33 = vsel %vm243_vm1, %v1520_v46, %v1521_v48  ;;  %v1566_v26 = vrot.slane %v2769_v37, 2 }
 0x1dc   :  { %1384 = vrot.lane.b32.xlu1 %v1377_v13, %s1915_s4  ;;  %1382 = vrot.lane.b32.xlu0 %v1375_v11, %s1915_s4  ;;  %v578_v59 = vadd.f32 %v2608_v60, %v546_v14  ;;  %v2789_v13 = vmul.f32 %v2626_v24, %v2553_v54  ;;  %v577_v11 = vadd.f32 %v2623_v22, %v545_v15  ;;  %v1568_v1 = vrot.slane %v1553_v12, 2 }
 0x1dd   :  { %v606_v43 = vpop.permute.xlu1 %605  ;;  %v604_v31 = vpop.permute.xlu0 %603  ;;  %v1660_v60 = vmul.f32 %v2626_v24, %v2551_v27  ;;  %v2799_v25 = vmul.f32 %v2626_v24, %v2582_v30  ;;  %v2802_v52 = vsel %vm243_vm1, %v1526_v61, %v1528_v58  ;;  %v2805_v62 = vsel %vm243_vm1, %v1525_v63, %v1526_v61 }
 0x1de   :  { %v616_v17 = vadd.f32 %v606_v43, %v576_v47  ;;  %v615_v29 = vadd.f32 %v604_v31, %v575_v16  ;;  %v1663_v22 = vmul.f32 %v2626_v24, %v2580_v56  ;;  %v2811_v48 = vsel %vm243_vm1, %v1561_v10, %v1563_v32 }
 0x1df   :  { %v2814_v2 = vsel %vm243_vm1, %v1560_v36, %v1561_v10  ;;  %v1551_v8 = vmul.f32 %v2611_v4, %v2580_v56  ;;  %v1672_v6 = vrot.slane %v1660_v60, 3  ;;  %v1678_v20 = vrot.slane %v2799_v25, 3 }
 0x1e0   :  { %1420 = vrot.lane.b32.xlu1 %v2715_v44, %s1916_s10  ;;  %1418 = vrot.lane.b32.xlu0 %v1410_v28, %s1916_s10  ;;  %v1673_v44 = vrot.slane %v2789_v13, 3  ;;  %v1677_v9 = vrot.slane %v1663_v22, 3  ;;  %v2824_v40 = vsel %vm243_vm1, %v1566_v26, %v1568_v1  ;;  %v2828_v41 = vmul.f32 %v2614_v21, %v2553_v54 }
 0x1e1   :  { %v610_v18 = vpop.permute.xlu1 %609  ;;  %v608_v19 = vpop.permute.xlu0 %607  ;;  %v2832_v4 = vmul.f32 %v2633_v49, %v2553_v54  ;;  %v2835_v14 = vstv %s2777_s13  ;;  %v1700_v46 = vmul.f32 %v2633_v49, %v2551_v27  ;;  %v2855_v16 = vmul.f32 %v2614_v21, %v2551_v27 }
 0x1e2   :  { %v618_v28 = vadd.f32 %v610_v18, %v578_v59  ;;  %v617_v53 = vadd.f32 %v608_v19, %v577_v11  ;;  %v2849_v42 = vsel %vm1065_vm2, %v1677_v9, %v1678_v20  ;;  %v1565_v12 = vrot.slane %v1551_v8, 2 }
 0x1e3   :  { %v1713_v61 = vrot.slane %v2832_v4, 3  ;;  %v1712_v43 = vrot.slane %v1700_v46, 3  ;;  %v2860_v31 = vmul.f32 %v2633_v49, %v2582_v30  ;;  %v1703_v58 = vmul.f32 %v2633_v49, %v2580_v56 }
 0x1e4   :  { %1424 = vrot.lane.b32.xlu1 %v2734_v39, %s1916_s10  ;;  %1422 = vrot.lane.b32.xlu0 %v2737_v57, %s1916_s10  ;;  %v2839_v39 = vmul.f32 %v2614_v21, %v2616_v23  ;;  %v2844_v57 = vsel %vm1065_vm2, %v1672_v6, %v1673_v44  ;;  %v1601_v63 = vrot.slane %v2828_v41, 2  ;;  %v2871_v10 = vmul.f32 %v2614_v21, %v2582_v30 }
 0x1e5   :  { %v646_v15 = vpop.permute.xlu1 %645  ;;  %v644_v35 = vpop.permute.xlu0 %643  ;;  %v1718_v59 = vrot.slane %v2860_v31, 3  ;;  %v1717_v11 = vrot.slane %v1703_v58, 3  ;;  %v2888_v22 = vsel %vm243_vm1, %v1565_v12, %v1566_v26  ;;  %v1740_v6 = vmul.f32 %v2636_v50, %v2551_v27 }
 0x1e6   :  { %v656_v37 = vadd.f32 %v646_v15, %v616_v17  ;;  %v655_v47 = vadd.f32 %v644_v35, %v615_v29  ;;  %v1741_v17 = vmul.f32 %v2636_v50, %v2553_v54  ;;  %v1742_v29 = vmul.f32 %v2636_v50, %v2616_v23 }
 0x1e7   :  { %v2893_v8 = vsel %vm1065_vm2, %v1717_v11, %v1718_v59  ;;  %v1744_v9 = vmul.f32 %v2636_v50, %v2582_v30  ;;  %v1603_v26 = vrot.slane %v2839_v39, 2  ;;  %v1743_v15 = vmul.f32 %v2636_v50, %v2580_v56 }
 0x1e8   :  { %1460 = vrot.lane.b32.xlu1 %v2744_v3, %s1917_s19  ;;  %1458 = vrot.lane.b32.xlu0 %v2747_v0, %s1917_s19  ;;  %v2879_v3 = vmul.f32 %v2614_v21, %v2675_v51  ;;  %v2884_v0 = vsel %vm1065_vm2, %v1712_v43, %v1713_v61  ;;  %v1753_v18 = vrot.slane %v1741_v17, 3  ;;  %v1755_v19 = vrot.slane %v1742_v29, 3 }
 0x1e9   :  { %v650_v32 = vpop.permute.xlu1 %649  ;;  %v648_v36 = vpop.permute.xlu0 %647  ;;  %v1752_v35 = vrot.slane %v1740_v6, 3  ;;  %v1758_v46 = vrot.slane %v1744_v9, 3  ;;  %v1237_v12 = vmul.f32 %v2639_v5, %v2553_v54  ;;  %v1757_v43 = vrot.slane %v1743_v15, 3 }
 0x1ea   :  { %v658_v1 = vadd.f32 %v650_v32, %v618_v28  ;;  %v657_v60 = vadd.f32 %v648_v36, %v617_v53  ;;  %v2905_v28 = vsel %vm1065_vm2, %v1753_v18, %v1755_v19  ;;  %v1745_v53 = vmul.f32 %v2636_v50, %v2675_v51 }
 0x1eb   :  { %v1239_v58 = vmul.f32 %v2639_v5, %v2582_v30  ;;  %v1238_v17 = vmul.f32 %v2639_v5, %v2580_v56  ;;  %v2920_v29 = vsel %vm1065_vm2, %v1752_v35, %v1753_v18  ;;  %v2922_v50 = vadd.f32 %v1237_v12, %v656_v37 }
 0x1ec   :  { %1464 = vrot.lane.b32.xlu1 %v2762_v38, %s1917_s19  ;;  %1462 = vrot.lane.b32.xlu0 %v2765_v7, %s1917_s19  ;;  %v1236_v38 = vmul.f32 %v2639_v5, %v2551_v27  ;;  %v1760_v7 = vrot.slane %v1745_v53, 3  ;;  %v1325_v36 = vmul.f32 %v2661_v45, %v2553_v54  ;;  %v1600_v11 = vrot.slane %v2855_v16, 2 }
 0x1ed   :  { %v2937_v18 = vsel %vm1065_vm2, %v1757_v43, %v1758_v46  ;;  %v2939_v37 = vadd.f32 %v1239_v58, %v658_v1  ;;  %v1326_v19 = vmul.f32 %v2661_v45, %v2616_v23  ;;  %v1329_v16 = vmul.f32 %v2661_v45, %v2675_v51 }
 0x1ee   :  { %v2924_v32 = vadd.f32 %v1236_v38, %v655_v47  ;;  %v2934_v5 = vsel %vm1065_vm2, %v1758_v46, %v1760_v7  ;;  %v2941_v47 = vadd.f32 %v1238_v17, %v657_v60  ;;  %v1337_v6 = vrot.slane %v1325_v36, 1 }
 0x1ef   :  { %v1327_v9 = vmul.f32 %v2661_v45, %v2580_v56  ;;  %v1477_v1 = vmul.f32 %v2690_v55, %v2553_v54  ;;  %v1339_v60 = vrot.slane %v1326_v19, 1  ;;  %v1478_v15 = vmul.f32 %v2690_v55, %v2616_v23 }
 0x1f0   :  { %1532 = vrot.lane.b32.xlu1 %v2780_v34, %s1915_s4  ;;  %1530 = vrot.lane.b32.xlu0 %v2784_v33, %s1915_s4  ;;  %v1324_v34 = vmul.f32 %v2661_v45, %v2551_v27  ;;  %v1328_v33 = vmul.f32 %v2661_v45, %v2582_v30  ;;  %v1476_v35 = vmul.f32 %v2690_v55, %v2551_v27  ;;  %v1344_v12 = vrot.slane %v1329_v16, 1 }
 0x1f1   :  { %v1341_v45 = vrot.slane %v1327_v9, 1  ;;  %v1489_v38 = vrot.slane %v1477_v1, 2  ;;  %v2964_v7 = vsel %vm130_vm0, %v1337_v6, %v1339_v60  ;;  %v1491_v58 = vrot.slane %v1478_v15, 2 }
 0x1f2   :  { %v1336_v53 = vrot.slane %v1324_v34, 1  ;;  %v1342_v46 = vrot.slane %v1328_v33, 1  ;;  %v1488_v17 = vrot.slane %v1476_v35, 2  ;;  %v1481_v19 = vmul.f32 %v2690_v55, %v2675_v51 }
 0x1f3   :  { %v2980_v34 = vsel %vm243_vm1, %v1489_v38, %v1491_v58  ;;  %v1479_v33 = vmul.f32 %v2690_v55, %v2580_v56  ;;  %v1629_v16 = vmul.f32 %v2835_v14, %v2553_v54  ;;  %v1630_v60 = vmul.f32 %v2835_v14, %v2616_v23 }
 0x1f4   :  { %1536 = vrot.lane.b32.xlu1 %v2802_v52, %s1915_s4  ;;  %1534 = vrot.lane.b32.xlu0 %v2805_v62, %s1915_s4  ;;  %v2967_v43 = vsel %vm130_vm0, %v1336_v53, %v1337_v6  ;;  %v2970_v36 = vsel %vm130_vm0, %v1342_v46, %v1344_v12  ;;  %v2973_v52 = vsel %vm130_vm0, %v1341_v45, %v1342_v46  ;;  %v1496_v1 = vrot.slane %v1481_v19, 2 }
 0x1f5   :  { %v1480_v62 = vmul.f32 %v2690_v55, %v2582_v30  ;;  %v2983_v6 = vsel %vm243_vm1, %v1488_v17, %v1489_v38  ;;  %v1628_v53 = vmul.f32 %v2835_v14, %v2551_v27  ;;  %v1493_v15 = vrot.slane %v1479_v33, 2 }
 0x1f6   :  { %v1641_v35 = vrot.slane %v1629_v16, 3  ;;  %v1632_v55 = vmul.f32 %v2835_v14, %v2582_v30  ;;  %v1633_v54 = vmul.f32 %v2835_v14, %v2675_v51  ;;  %v1631_v12 = vmul.f32 %v2835_v14, %v2580_v56 }
 0x1f7   :  { %v1494_v9 = vrot.slane %v1480_v62, 2  ;;  %v1640_v46 = vrot.slane %v1628_v53, 3  ;;  %v1591_v45 = vmul.f32 %v2614_v21, %v2580_v56  ;;  %v1604_v21 = vsel %vm243_vm1, %v1601_v63, %v1603_v26 }
 0x1f8   :  { %1572 = vrot.lane.b32.xlu1 %v2811_v48, %s1916_s10  ;;  %1570 = vrot.lane.b32.xlu0 %v2814_v2, %s1916_s10  ;;  %v1643_v2 = vrot.slane %v1630_v60, 3  ;;  %v1646_v38 = vrot.slane %v1632_v55, 3  ;;  %v1648_v58 = vrot.slane %v1633_v54, 3  ;;  %v1645_v14 = vrot.slane %v1631_v12, 3 }
 0x1f9   :  { %v3002_v48 = vsel %vm243_vm1, %v1494_v9, %v1496_v1  ;;  %v3009_v27 = vsel %vm243_vm1, %v1493_v15, %v1494_v9  ;;  %v3019_v17 = vsel %vm1065_vm2, %v1640_v46, %v1641_v35  ;;  %v1602_v62 = vsel %vm243_vm1, %v1600_v11, %v1601_v63 }
 0x1fa   :  { %v3016_v30 = vsel %vm1065_vm2, %v1641_v35, %v1643_v2  ;;  %v3022_v56 = vsel %vm1065_vm2, %v1646_v38, %v1648_v58  ;;  %v1608_v19 = vrot.slane %v2879_v3, 2  ;;  %v1605_v33 = vrot.slane %v1591_v45, 2 }
 0x1fb   :  { %v1662_v16 = vmul.f32 %v2626_v24, %v2616_v23  ;;  %v1665_v41 = vmul.f32 %v2626_v24, %v2675_v51  ;;  %v1702_v11 = vmul.f32 %v2633_v49, %v2616_v23  ;;  %v1705_v1 = vmul.f32 %v2633_v49, %v2675_v51 }
 0x1fc   :  { %1576 = vrot.lane.b32.xlu1 %v2824_v40, %s1916_s10  ;;  %1574 = vrot.lane.b32.xlu0 %v2888_v22, %s1916_s10  ;;  %v1606_v40 = vrot.slane %v2871_v10, 2  ;;  %v3031_v22 = vsel %vm1065_vm2, %v1645_v14, %v1646_v38 }
 0x1fd   :  { %v1675_v26 = vrot.slane %v1662_v16, 3  ;;  %v1680_v3 = vrot.slane %v1665_v41, 3  ;;  %v1715_v9 = vrot.slane %v1702_v11, 3  ;;  %v1720_v13 = vrot.slane %v1705_v1, 3 }
 0x1fe   :  { %v1609_v39 = vsel %vm243_vm1, %v1606_v40, %v1608_v19  ;;  %v1607_v10 = vsel %vm243_vm1, %v1605_v33, %v1606_v40 }
 0x1ff   :  { %v1676_v63 = vsel %vm1065_vm2, %v1673_v44, %v1675_v26  ;;  %v1681_v24 = vsel %vm1065_vm2, %v1678_v20, %v1680_v3  ;;  %v1716_v23 = vsel %vm1065_vm2, %v1713_v61, %v1715_v9  ;;  %v1721_v25 = vsel %vm1065_vm2, %v1718_v59, %v1720_v13 }
 0x200   :  { %1612 = vrot.lane.b32.xlu1 %v1604_v21, %s1917_s19  ;;  %1610 = vrot.lane.b32.xlu0 %v1602_v62, %s1917_s19 }
 0x204   :  { %1616 = vrot.lane.b32.xlu1 %v1609_v39, %s1917_s19  ;;  %1614 = vrot.lane.b32.xlu0 %v1607_v10, %s1917_s19 }
 0x208   :  { %1684 = vrot.lane.b32.xlu1 %v1676_v63, %s1915_s4  ;;  %1682 = vrot.lane.b32.xlu0 %v2844_v57, %s1915_s4 }
 0x20c   :  { %1688 = vrot.lane.b32.xlu1 %v1681_v24, %s1915_s4  ;;  %1686 = vrot.lane.b32.xlu0 %v2849_v42, %s1915_s4  ;;  %s1920_s4 = smov [#allocation8]  }
 0x210   :  { %1724 = vrot.lane.b32.xlu1 %v1716_v23, %s1916_s10  ;;  %1722 = vrot.lane.b32.xlu0 %v2884_v0, %s1916_s10 }
 0x214   :  { %1728 = vrot.lane.b32.xlu1 %v1721_v25, %s1916_s10  ;;  %1726 = vrot.lane.b32.xlu0 %v2893_v8, %s1916_s10  ;;  %s1788_s10 = sshll.u32 %s1920_s4, 4  ;;  %s1789_s10 = int_to_ptr.vmem [resolvable:$true] %s1788_s10 }
 0x215   :  { %p1892_p11 = scmp.lt.s32.totalorder %s1789_s10, %s1789_s10 }
 0x218   :  { %1764 = vrot.lane.b32.xlu1 %v2905_v28, %s1917_s19  ;;  %1762 = vrot.lane.b32.xlu0 %v2920_v29, %s1917_s19 }
 0x21c   :  { %1768 = vrot.lane.b32.xlu1 %v2934_v5, %s1917_s19  ;;  %1766 = vrot.lane.b32.xlu0 %v2937_v18, %s1917_s19  ;;  %s1887_s19 = scalar_lea.vmem %s1789_s10, 512 }
 0x21d   :  { %p1888_p10 = scmp.ne.s32.totalorder %s1789_s10, %s1887_s19  ;;  %p1893_p12 = scmp.lt.s32.totalorder %s1887_s19, %s1887_s19 }
 0x21f   :  { %p1894_p13 = por %p1893_p12, %p1892_p11 }
 0x221   :  { %p1895_p0 = pnand %p1894_p13, %p1888_p10 }
 0x232   :  { %v1257_v49 = vpop.permute.xlu1 %1256  ;;  %v1255_v51 = vpop.permute.xlu0 %1254 }
 0x233   :  { %v1267_v31 = vadd.f32 %v1257_v49, %v2922_v50  ;;  %v1266_v0 = vadd.f32 %v1255_v51, %v2924_v32 }
 0x236   :  { %v1261_v44 = vpop.permute.xlu1 %1260  ;;  %v1259_v20 = vpop.permute.xlu0 %1258 }
 0x237   :  { %v1269_v5 = vadd.f32 %v1261_v44, %v2939_v37  ;;  %v1268_v18 = vadd.f32 %v1259_v20, %v2941_v47 }
 0x23a   :  { %v1283_v4 = vpop.permute.xlu1 %1282  ;;  %v1281_v57 = vpop.permute.xlu0 %1280 }
 0x23b   :  { %v1293_v59 = vadd.f32 %v1283_v4, %v1267_v31  ;;  %v1292_v8 = vadd.f32 %v1281_v57, %v1266_v0 }
 0x23e   :  { %v1287_v42 = vpop.permute.xlu1 %1286  ;;  %v1285_v61 = vpop.permute.xlu0 %1284 }
 0x23f   :  { %v1295_v15 = vadd.f32 %v1287_v42, %v1269_v5  ;;  %v1294_v35 = vadd.f32 %v1285_v61, %v1268_v18 }
 0x242   :  { %v1309_v28 = vpop.permute.xlu1 %1308  ;;  %v1307_v29 = vpop.permute.xlu0 %1306 }
 0x243   :  { %v1319_v60 = vadd.f32 %v1309_v28, %v1293_v59  ;;  %v1318_v53 = vadd.f32 %v1307_v29, %v1292_v8 }
 0x245   :  { %v1351_v55 = vadd.f32 %v2964_v7, %v1319_v60  ;;  %v1350_v54 = vadd.f32 %v2967_v43, %v1318_v53 }
 0x246   :  { %v1313_v2 = vpop.permute.xlu1 %1312  ;;  %v1311_v50 = vpop.permute.xlu0 %1310 }
 0x247   :  { %v1321_v46 = vadd.f32 %v1313_v2, %v1295_v15  ;;  %v1320_v32 = vadd.f32 %v1311_v50, %v1294_v35 }
 0x249   :  { %v1353_v12 = vadd.f32 %v2970_v36, %v1321_v46  ;;  %v1352_v45 = vadd.f32 %v2973_v52, %v1320_v32 }
 0x24a   :  { %v1381_v38 = vpop.permute.xlu1 %1380  ;;  %v1379_v37 = vpop.permute.xlu0 %1378 }
 0x24b   :  { %v1391_v19 = vadd.f32 %v1381_v38, %v1351_v55  ;;  %v1390_v7 = vadd.f32 %v1379_v37, %v1350_v54 }
 0x24e   :  { %v1385_v58 = vpop.permute.xlu1 %1384  ;;  %v1383_v47 = vpop.permute.xlu0 %1382 }
 0x24f   :  { %v1393_v10 = vadd.f32 %v1385_v58, %v1353_v12  ;;  %v1392_v26 = vadd.f32 %v1383_v47, %v1352_v45 }
 0x252   :  { %v1421_v14 = vpop.permute.xlu1 %1420  ;;  %v1419_v21 = vpop.permute.xlu0 %1418 }
 0x253   :  { %v1431_v33 = vadd.f32 %v1421_v14, %v1391_v19  ;;  %v1430_v43 = vadd.f32 %v1419_v21, %v1390_v7 }
 0x256   :  { %v1425_v40 = vpop.permute.xlu1 %1424  ;;  %v1423_v62 = vpop.permute.xlu0 %1422 }
 0x257   :  { %v1433_v63 = vadd.f32 %v1425_v40, %v1393_v10  ;;  %v1432_v52 = vadd.f32 %v1423_v62, %v1392_v26 }
 0x25a   :  { %v1461_v16 = vpop.permute.xlu1 %1460  ;;  %v1459_v39 = vpop.permute.xlu0 %1458 }
 0x25b   :  { %v1471_v41 = vadd.f32 %v1461_v16, %v1431_v33  ;;  %v1470_v36 = vadd.f32 %v1459_v39, %v1430_v43 }
 0x25d   :  { %v1503_v3 = vadd.f32 %v2980_v34, %v1471_v41  ;;  %v1502_v11 = vadd.f32 %v2983_v6, %v1470_v36 }
 0x25e   :  { %v1465_v24 = vpop.permute.xlu1 %1464  ;;  %v1463_v9 = vpop.permute.xlu0 %1462 }
 0x25f   :  { %v1473_v1 = vadd.f32 %v1465_v24, %v1433_v63  ;;  %v1472_v23 = vadd.f32 %v1463_v9, %v1432_v52 }
 0x261   :  { %v1505_v13 = vadd.f32 %v3002_v48, %v1473_v1  ;;  %v1504_v25 = vadd.f32 %v3009_v27, %v1472_v23 }
 0x262   :  { %v1533_v49 = vpop.permute.xlu1 %1532  ;;  %v1531_v51 = vpop.permute.xlu0 %1530 }
 0x263   :  { %v1543_v31 = vadd.f32 %v1533_v49, %v1503_v3  ;;  %v1542_v34 = vadd.f32 %v1531_v51, %v1502_v11 }
 0x266   :  { %v1537_v44 = vpop.permute.xlu1 %1536  ;;  %v1535_v20 = vpop.permute.xlu0 %1534 }
 0x267   :  { %v1545_v28 = vadd.f32 %v1537_v44, %v1505_v13  ;;  %v1544_v29 = vadd.f32 %v1535_v20, %v1504_v25 }
 0x26a   :  { %v1573_v4 = vpop.permute.xlu1 %1572  ;;  %v1571_v57 = vpop.permute.xlu0 %1570 }
 0x26b   :  { %v1583_v0 = vadd.f32 %v1573_v4, %v1543_v31  ;;  %v1582_v6 = vadd.f32 %v1571_v57, %v1542_v34 }
 0x26e   :  { %v1577_v42 = vpop.permute.xlu1 %1576  ;;  %v1575_v61 = vpop.permute.xlu0 %1574 }
 0x26f   :  { %v1585_v18 = vadd.f32 %v1577_v42, %v1545_v28  ;;  %v1584_v27 = vadd.f32 %v1575_v61, %v1544_v29 }
 0x272   :  { %v1613_v59 = vpop.permute.xlu1 %1612  ;;  %v1611_v8 = vpop.permute.xlu0 %1610 }
 0x273   :  { %v1623_v5 = vadd.f32 %v1613_v59, %v1583_v0  ;;  %v1622_v48 = vadd.f32 %v1611_v8, %v1582_v6 }
 0x275   :  { %v1655_v60 = vadd.f32 %v3016_v30, %v1623_v5  ;;  %v1654_v53 = vadd.f32 %v3019_v17, %v1622_v48 }
 0x276   :  { %v1617_v15 = vpop.permute.xlu1 %1616  ;;  %v1615_v35 = vpop.permute.xlu0 %1614 }
 0x277   :  { %v1625_v55 = vadd.f32 %v1617_v15, %v1585_v18  ;;  %v1624_v54 = vadd.f32 %v1615_v35, %v1584_v27 }
 0x279   :  { %v1657_v2 = vadd.f32 %v3022_v56, %v1625_v55  ;;  %v1656_v50 = vadd.f32 %v3031_v22, %v1624_v54 }
 0x27a   :  { %v1685_v46 = vpop.permute.xlu1 %1684  ;;  %v1683_v32 = vpop.permute.xlu0 %1682 }
 0x27b   :  { %v1695_v14 = vadd.f32 %v1685_v46, %v1655_v60  ;;  %v1694_v30 = vadd.f32 %v1683_v32, %v1654_v53 }
 0x27e   :  { %v1689_v12 = vpop.permute.xlu1 %1688  ;;  %v1687_v45 = vpop.permute.xlu0 %1686 }
 0x27f   :  { %v1697_v19 = vadd.f32 %v1689_v12, %v1657_v2  ;;  %v1696_v7 = vadd.f32 %v1687_v45, %v1656_v50 }
 0x282   :  { %v1725_v38 = vpop.permute.xlu1 %1724  ;;  %v1723_v37 = vpop.permute.xlu0 %1722 }
 0x283   :  { %v1735_v21 = vadd.f32 %v1725_v38, %v1695_v14  ;;  %v1734_v17 = vadd.f32 %v1723_v37, %v1694_v30 }
 0x286   :  { %v1729_v58 = vpop.permute.xlu1 %1728  ;;  %v1727_v47 = vpop.permute.xlu0 %1726 }
 0x287   :  { %v1737_v22 = vadd.f32 %v1729_v58, %v1697_v19  ;;  %v1736_v43 = vadd.f32 %v1727_v47, %v1696_v7 }
 0x28a   :  { %v1765_v40 = vpop.permute.xlu1 %1764  ;;  %v1763_v62 = vpop.permute.xlu0 %1762 }
 0x28b   :  { %v1775_v56 = vadd.f32 %v1765_v40, %v1735_v21  ;;  %v1774_v33 = vadd.f32 %v1763_v62, %v1734_v17 }
 0x28d   :  { %1780 = vst.msk [vmem:[#allocation8 + $0x8] sm:$0xff] %vm1778_vm6, %v1775_v56  ;;  %1779 = vst.msk [vmem:[#allocation8] sm:$0xff] %vm1778_vm6, %v1774_v33 }
 0x28e   :  { %v1769_v16 = vpop.permute.xlu1 %1768  ;;  %v1767_v39 = vpop.permute.xlu0 %1766 }
 0x28f   :  { %v1777_v10 = vadd.f32 %v1769_v16, %v1737_v22  ;;  %v1776_v26 = vadd.f32 %v1767_v39, %v1736_v43 }
 0x291   :  { %1782 = vst.msk [vmem:[#allocation8 + $0x18] sm:$0xff] %vm1778_vm6, %v1777_v10  ;;  %1781 = vst.msk [vmem:[#allocation8 + $0x10] sm:$0xff] %vm1778_vm6, %v1776_v26 }
 0x292   :  { %1898 = shalt.err (!%p1895_p0)
}
 0x293   :  { %s1921_s14 = smov 128   ;;  %s1922_s15 = smov 8  }
 0x294   :  { %1794 = dma.vmem_to_hbm [thread:$0]  %s1789_s10, 512, %s3109_s3, [#allocation4], %s1921_s14, %s1921_s14, %s1922_s15  }
 0x295   :  { %1911 = dma.done.wait [#allocation4], 512  }
 0x296   :  { %1912 = vsyncadd [#allocation4], 4294966784 }
 0x297   :  { %1798 = vsyncpa [#allocation4], 1 }
 0x298   :  { %1799 = vsyncpa [#allocation5], 1 }
 0x299   :  { %1800 = vsyncpa [#allocation7], 1 }

</bundles_post_ra>
